<compile_context>
chip_gen: v7x
topology: tpu7x:2x2x1
jax: 0.10.0
libtpu: 0.0.40
codegen_flags: <defaults>
</compile_context>

<pallas_src>
import functools

import jax
import jax.numpy as jnp
from jax.experimental import pallas as pl
from jax.experimental.pallas import tpu as pltpu


# --------------------------- fused 3x3 stride-2 conv kernel -----------------------------

def _conv3x3s2_kernel(xm_ref, xh_ref, w_ref, b_ref, o_ref, *,
                      tr, wo, cin, apply_relu):
    """One (batch-tile, row-band) step of a 3x3 / stride-2 / pad-1 conv (+ReLU).

    xm_ref: (bt, 2*tr, wp2, 2*cin) bf16  padded input band; column pairs merged
                                          into the lane dim (free, row-major reshape).
    xh_ref: (bt, 1,    wp2, 2*cin) bf16  one-row halo just below the band.
    w_ref : (9*cin, cout)          bf16  tap-major weights, K ordered (kh, kw, c).
    b_ref : (1, cout)              f32
    o_ref : (bt, tr, wo, cout)     bf16
    """
    bt = o_ref.shape[0]
    cout = o_ref.shape[-1]
    wp2 = xm_ref.shape[2]
    c2 = xm_ref.shape[3]

    # Row phases: free split of an outer dim -- no strided reads needed.
    xm = xm_ref[...].reshape(bt, tr, 2, wp2, c2)
    xh = xh_ref[...]                                    # (bt, 1, wp2, c2)

    pieces = []
    for di in range(3):                                 # kernel row tap
        if di < 2:
            rows = xm[:, :, di]                         # padded rows 2*oi + di
        elif tr == 1:
            rows = xh
        else:
            # padded rows 2*oi + 2: band rows 2,4,... plus the one-row halo.
            rows = jnp.concatenate([xm[:, 1:, 0], xh], axis=1)
        # Column taps dj=0 and dj=1 are exactly the full merged lanes at wp2
        # offset 0; tap dj=2 is the low half of the lanes at wp2 offset 1.
        # All slices are unit-stride and lane-offset 0.
        pieces.append(rows[:, :, 0:wo, :])              # taps (di, 0) and (di, 1)
        pieces.append(rows[:, :, 1:1 + wo, 0:cin])      # tap  (di, 2)

    # im2col LHS built once per tile; a single MXU matmul over K = 9*cin.
    lhs = jnp.concatenate(pieces, axis=-1).reshape(bt * tr * wo, 9 * cin)
    acc = jnp.dot(lhs, w_ref[...], preferred_element_type=jnp.float32)
    acc = acc + b_ref[...]                              # f32 bias, fused epilogue
    if apply_relu:
        acc = jnp.maximum(acc, 0.0)
    o_ref[...] = acc.reshape(bt, tr, wo, cout).astype(o_ref.dtype)


def _divisors(n):
    return [d for d in range(1, n + 1) if n % d == 0]


def _choose_tiles(B, ho, wo, cin, cout, wp2, vmem_budget=40 << 20, m_target=256):
    """Pick (batch_tile, row_tile) so the double-buffered working set fits a
    per-generation-safe VMEM budget (v7x has only 64 MiB/TC) while the matmul M
    is large enough to keep the MXU fed, preferring >= 2 parallel grid steps."""
    c2 = 2 * cin

    def ws(bt, tr):
        band = bt * (2 * tr + 1) * wp2 * c2 * 2          # bf16 input band + halo
        outb = bt * tr * wo * cout * 2                   # bf16 output tile
        wgt = 9 * cin * cout * 2 + cout * 4              # weights + bias
        live = bt * tr * wo * (9 * cin * 2 + cout * 4)   # im2col LHS + f32 acc
        return 2 * (band + outb + wgt) + live            # x2: pipeline double-buffer

    # Smallest row band whose M reaches the target (or the whole image), then
    # shrink until the working set fits the budget.
    tr = next((d for d in _divisors(ho) if d * wo >= m_target), ho)
    while tr > 1 and ws(1, tr) > vmem_budget:
        tr = max(d for d in _divisors(ho) if d < tr)

    # Fold batch into M for tiny late-stage feature maps, but keep >= 2 grid
    # steps (both v7x TensorCores busy) and stay inside the budget.
    bt = next((d for d in _divisors(B) if d * tr * wo >= m_target), B)
    while bt > 1 and ((B // bt) * (ho // tr) < 2 or ws(bt, tr) > vmem_budget):
        bt = max(d for d in _divisors(B) if d < bt)
    return bt, tr, ws(bt, tr)


def conv3x3_s2_pallas(x_nhwc, w_kc, b, *, apply_relu=True):
    """3x3 / stride-2 / pad-1 conv (+ReLU) as one Pallas kernel per stage.

    x_nhwc: (B, H, W, Cin) bf16 (real channel count -- no 128 padding).
    w_kc:   (9*Cin, Cout)  bf16 tap-major,  b: (1, Cout) f32.
    Returns (B, Ho, Wo, Cout) bf16.
    """
    B, H, W, cin = x_nhwc.shape
    cout = w_kc.shape[-1]
    ho = (H - 1) // 2 + 1
    wo = (W - 1) // 2 + 1

    # Spatial zero-pad by 1 (W rounded up so the padded width is even).  The
    # reshape merging (column pair, channel) into the lane dim is a pure
    # row-major relabel (no copy) and provides the even/odd column phases
    # without any transpose / HBM relayout.
    # TODO(synk): fuse this +1 pad into the producing conv's epilogue to remove
    # the one remaining per-stage HBM copy.
    Hp = H + 2
    Wp = W + 2 + ((W + 2) % 2)
    wp2 = Wp // 2
    c2 = 2 * cin
    xp = jnp.pad(x_nhwc, ((0, 0), (1, Hp - H - 1), (1, Wp - W - 1), (0, 0)))
    xp = xp.reshape(B, Hp, wp2, c2)

    bt, tr, ws_bytes = _choose_tiles(B, ho, wo, cin, cout, wp2)
    nb, nt = B // bt, ho // tr

    kernel = functools.partial(_conv3x3s2_kernel, tr=tr, wo=wo, cin=cin,
                               apply_relu=apply_relu)
    # NOTE: the weight/bias index maps are constant; at these widths they are a
    # few tens of KB so their default double-buffering is negligible.
    out = pl.pallas_call(
        kernel,
        out_shape=jax.ShapeDtypeStruct((B, ho, wo, cout), jnp.bfloat16),
        grid=(nb, nt),
        in_specs=[
            # Main band: output rows [t*tr, (t+1)*tr) need padded rows
            # [2*t*tr, 2*t*tr + 2*tr) ...
            pl.BlockSpec((bt, 2 * tr, wp2, c2), lambda ib, it: (ib, it, 0, 0)),
            # ... plus a one-row halo at padded row 2*tr*(it+1) -- a second
            # BlockSpec view of the same array expresses the overlapping window
            # without needing halo support in the blocked index map.
            pl.BlockSpec((bt, 1, wp2, c2),
                         lambda ib, it: (ib, 2 * tr * (it + 1), 0, 0)),
            pl.BlockSpec((9 * cin, cout), lambda ib, it: (0, 0)),
            pl.BlockSpec((1, cout), lambda ib, it: (0, 0)),
        ],
        out_specs=pl.BlockSpec((bt, tr, wo, cout), lambda ib, it: (ib, it, 0, 0)),
        compiler_params=pltpu.CompilerParams(
            dimension_semantics=("parallel", "parallel"),
            vmem_limit_bytes=int(min(48 << 20, max(16 << 20, 2 * ws_bytes))),
        ),
    )(xp, xp, w_kc, b)
    return out


def _prep_conv(weight, bias):
    """PyTorch-layout (Cout, Cin, 3, 3) -> tap-major (9*Cin, Cout) bf16 + f32 bias."""
    cout, cin = weight.shape[0], weight.shape[1]
    w = jnp.transpose(weight, (2, 3, 1, 0)).reshape(9 * cin, cout)  # K = (kh, kw, c)
    return w.astype(jnp.bfloat16), bias.astype(jnp.float32).reshape(1, cout)


# ------------------------------ mask resize (F.interpolate) -----------------------------

def interpolate_mask_nearest(mask, ho, wo):
    """F.interpolate(m[None].float(), size=(ho, wo)).to(bool)[0]
    (default 'nearest': src_idx = floor(dst_idx * in / out))."""
    # TODO(synk): pure index-gather glue kept in plain JAX (no matmul/reduce hot path).
    B, H, W = mask.shape
    ri = (jnp.arange(ho) * H) // ho
    ci = (jnp.arange(wo) * W) // wo
    return mask[:, ri][:, :, ci]


# ------------------------------- parameters / backbone ----------------------------------

def init_backbone_params(key, in_chans=4, stem_chans=16, embed_dims=(32, 64)):
    def conv_init(k, cin, cout):
        k1, k2 = jax.random.split(k)
        fan_in = cin * 9
        w = jax.random.normal(k1, (cout, cin, 3, 3), jnp.float32) / jnp.sqrt(fan_in)
        b = jax.random.normal(k2, (cout,), jnp.float32) * 0.01
        return w, b

    keys = jax.random.split(key, 1 + len(embed_dims))
    params = {"stem": conv_init(keys[0], in_chans, stem_chans), "stages": []}
    cprev = stem_chans
    for i, c in enumerate(embed_dims):
        params["stages"].append(conv_init(keys[1 + i], cprev, c))
        cprev = c
    return params


def backbone_base_forward(params, tensors, mask):
    """Mirrors BackboneBase.forward:
       x = stem(tensors); for stage in stages: x = stage(x); xs.append(x)
       out['layer{i}'] = (x_i, mask resized to x_i spatial size)."""
    # Single NCHW -> NHWC transpose + bf16 cast at the module boundary; real
    # channel counts are kept everywhere (no padding to 128).
    x = jnp.transpose(tensors, (0, 2, 3, 1)).astype(jnp.bfloat16)

    # Stem.
    w, b = params["stem"]
    x = conv3x3_s2_pallas(x, *_prep_conv(w, b), apply_relu=True)

    # Stages (features collected per stage, like the PyTorch module).
    xs = []
    for (w, b) in params["stages"]:
        x = conv3x3_s2_pallas(x, *_prep_conv(w, b), apply_relu=True)
        xs.append(x)

    out = {}
    for layer, x_nhwc in enumerate(xs):
        ho, wo = x_nhwc.shape[1], x_nhwc.shape[2]
        # NCHW f32 only at the module boundary to mirror the PyTorch output;
        # downstream consumers that accept NHWC bf16 can skip this relayout.
        feat = jnp.transpose(x_nhwc, (0, 3, 1, 2)).astype(jnp.float32)
        m = interpolate_mask_nearest(mask, ho, wo)
        out["layer{}".format(layer)] = (feat, m)
    return out


# --------------------------------- pure-JAX reference -----------------------------------

def _ref_conv(x_nchw, w, b):
    y = jax.lax.conv_general_dilated(
        x_nchw, w, window_strides=(2, 2), padding=((1, 1), (1, 1)),
        dimension_numbers=("NCHW", "OIHW", "NCHW"))
    return jnp.maximum(y + b[None, :, None, None], 0.0)


# ---------------------------------------- main ------------------------------------------

if __name__ == "__main__":
    key = jax.random.PRNGKey(0)
    k_img, k_par = jax.random.split(key)

    B, C, H, W = 2, 4, 16, 16
    tensors = jax.random.normal(k_img, (B, C, H, W), jnp.float32)

    # Padding mask (True = padded), second sample padded on right/bottom quarter.
    rr = jnp.arange(H)[:, None]
    cc = jnp.arange(W)[None, :]
    pad_region = (rr >= 12) | (cc >= 12)
    mask = jnp.stack([jnp.zeros((H, W), jnp.bool_), pad_region], axis=0)

    params = init_backbone_params(k_par, in_chans=C, stem_chans=16,
                                  embed_dims=(32, 64))

    fwd = jax.jit(backbone_base_forward)
    out = fwd(params, tensors, mask)
    out = jax.block_until_ready(out)

    # Shape / dtype checks mirroring the PyTorch module.
    assert out["layer0"][0].shape == (B, 32, 4, 4)
    assert out["layer0"][1].shape == (B, 4, 4) and out["layer0"][1].dtype == jnp.bool_
    assert out["layer1"][0].shape == (B, 64, 2, 2)
    assert out["layer1"][1].shape == (B, 2, 2) and out["layer1"][1].dtype == jnp.bool_

    # Numerical check against an f32 XLA conv reference (bf16 inputs, f32 accum).
    r = _ref_conv(tensors, *params["stem"])
    refs = []
    for (w, b) in params["stages"]:
        r = _ref_conv(r, w, b)
        refs.append(r)
    assert float(jnp.max(jnp.abs(out["layer0"][0] - refs[0]))) < 0.15
    assert float(jnp.max(jnp.abs(out["layer1"][0] - refs[1]))) < 0.15

    print("KERNEL_OK")
</pallas_src>

<mosaic_0001>
module attributes {stable_mosaic.version = 11 : i64} {
  func.func @_conv3x3s2_kernel(%arg0: i32, %arg1: i32, %arg2: memref<1x16x9x8xbf16, #tpu.memory_space<vmem>>, %arg3: memref<1x1x9x8xbf16, #tpu.memory_space<vmem>>, %arg4: memref<36x16xbf16, #tpu.memory_space<vmem>>, %arg5: memref<1x16xf32, #tpu.memory_space<vmem>>, %arg6: memref<1x8x8x16xbf16, #tpu.memory_space<vmem>>) attributes {dimension_semantics = [#tpu.dimension_semantics<parallel>, #tpu.dimension_semantics<parallel>], iteration_bounds = array<i64: 2, 1>, scalar_prefetch = 0 : i64, scratch_operands = 0 : i64, tpu.core_type = #tpu.core_type<tc>, window_params = [{transform_indices = @transform_0, window_bounds = array<i64: 1, 16, 9, 8>}, {transform_indices = @transform_1, window_bounds = array<i64: 1, 1, 9, 8>}, {pipeline_mode = #tpu.pipeline_mode<synchronous>, transform_indices = @transform_2, window_bounds = array<i64: 36, 16>}, {pipeline_mode = #tpu.pipeline_mode<synchronous>, transform_indices = @transform_3, window_bounds = array<i64: 1, 16>}, {transform_indices = @transform_4, window_bounds = array<i64: 1, 8, 8, 16>}]} {
    %c0 = arith.constant 0 : index
    %c0_0 = arith.constant 0 : index
    %c0_1 = arith.constant 0 : index
    %c0_2 = arith.constant 0 : index
    %0 = vector.load %arg2[%c0, %c0_0, %c0_1, %c0_2] : memref<1x16x9x8xbf16, #tpu.memory_space<vmem>>, vector<1x16x9x8xbf16>
    %1 = vector.shape_cast %0 : vector<1x16x9x8xbf16> to vector<1x8x2x9x8xbf16>
    %c0_3 = arith.constant 0 : index
    %c0_4 = arith.constant 0 : index
    %c0_5 = arith.constant 0 : index
    %c0_6 = arith.constant 0 : index
    %2 = vector.load %arg3[%c0_3, %c0_4, %c0_5, %c0_6] : memref<1x1x9x8xbf16, #tpu.memory_space<vmem>>, vector<1x1x9x8xbf16>
    %3 = vector.extract_strided_slice %1 {offsets = [0, 0, 0, 0, 0], sizes = [1, 8, 1, 9, 8], strides = [1, 1, 1, 1, 1]} : vector<1x8x2x9x8xbf16> to vector<1x8x1x9x8xbf16>
    %4 = vector.shape_cast %3 : vector<1x8x1x9x8xbf16> to vector<1x8x9x8xbf16>
    %5 = vector.extract_strided_slice %4 {offsets = [0, 0, 0, 0], sizes = [1, 8, 8, 8], strides = [1, 1, 1, 1]} : vector<1x8x9x8xbf16> to vector<1x8x8x8xbf16>
    %6 = vector.extract_strided_slice %4 {offsets = [0, 0, 1, 0], sizes = [1, 8, 8, 4], strides = [1, 1, 1, 1]} : vector<1x8x9x8xbf16> to vector<1x8x8x4xbf16>
    %7 = vector.extract_strided_slice %1 {offsets = [0, 0, 1, 0, 0], sizes = [1, 8, 1, 9, 8], strides = [1, 1, 1, 1, 1]} : vector<1x8x2x9x8xbf16> to vector<1x8x1x9x8xbf16>
    %8 = vector.shape_cast %7 : vector<1x8x1x9x8xbf16> to vector<1x8x9x8xbf16>
    %9 = vector.extract_strided_slice %8 {offsets = [0, 0, 0, 0], sizes = [1, 8, 8, 8], strides = [1, 1, 1, 1]} : vector<1x8x9x8xbf16> to vector<1x8x8x8xbf16>
    %10 = vector.extract_strided_slice %8 {offsets = [0, 0, 1, 0], sizes = [1, 8, 8, 4], strides = [1, 1, 1, 1]} : vector<1x8x9x8xbf16> to vector<1x8x8x4xbf16>
    %11 = vector.extract_strided_slice %1 {offsets = [0, 1, 0, 0, 0], sizes = [1, 7, 1, 9, 8], strides = [1, 1, 1, 1, 1]} : vector<1x8x2x9x8xbf16> to vector<1x7x1x9x8xbf16>
    %12 = vector.shape_cast %11 : vector<1x7x1x9x8xbf16> to vector<1x7x9x8xbf16>
    %13 = tpu.concatenate %12, %2 in 1 : vector<1x7x9x8xbf16>, vector<1x1x9x8xbf16> -> vector<1x8x9x8xbf16>
    %14 = vector.extract_strided_slice %13 {offsets = [0, 0, 0, 0], sizes = [1, 8, 8, 8], strides = [1, 1, 1, 1]} : vector<1x8x9x8xbf16> to vector<1x8x8x8xbf16>
    %15 = vector.extract_strided_slice %13 {offsets = [0, 0, 1, 0], sizes = [1, 8, 8, 4], strides = [1, 1, 1, 1]} : vector<1x8x9x8xbf16> to vector<1x8x8x4xbf16>
    %16 = tpu.concatenate %5, %6, %9, %10, %14, %15 in 3 : vector<1x8x8x8xbf16>, vector<1x8x8x4xbf16>, vector<1x8x8x8xbf16>, vector<1x8x8x4xbf16>, vector<1x8x8x8xbf16>, vector<1x8x8x4xbf16> -> vector<1x8x8x36xbf16>
    %17 = vector.shape_cast %16 : vector<1x8x8x36xbf16> to vector<64x36xbf16>
    %c0_7 = arith.constant 0 : index
    %c0_8 = arith.constant 0 : index
    %18 = vector.load %arg4[%c0_7, %c0_8] : memref<36x16xbf16, #tpu.memory_space<vmem>>, vector<36x16xbf16>
    %cst = arith.constant dense<0.000000e+00> : vector<64x16xf32>
    %19 = tpu.matmul %17, %18, %cst {dimension_numbers = #tpu.dot_dimension_numbers<[1], [0], [0], [1], [0, 0, 1, 1], [], []>} : vector<64x36xbf16>, vector<36x16xbf16>, vector<64x16xf32> -> vector<64x16xf32>
    %c0_9 = arith.constant 0 : index
    %c0_10 = arith.constant 0 : index
    %20 = vector.load %arg5[%c0_9, %c0_10] : memref<1x16xf32, #tpu.memory_space<vmem>>, vector<1x16xf32>
    %21 = vector.broadcast %20 : vector<1x16xf32> to vector<64x16xf32>
    %22 = arith.addf %19, %21 : vector<64x16xf32>
    %cst_11 = arith.constant 0.000000e+00 : f32
    %23 = vector.broadcast %cst_11 : f32 to vector<64x16xf32>
    %24 = arith.maximumf %22, %23 : vector<64x16xf32>
    %25 = vector.shape_cast %24 : vector<64x16xf32> to vector<1x8x8x16xf32>
    %26 = arith.truncf %25 : vector<1x8x8x16xf32> to vector<1x8x8x16xbf16>
    %c0_12 = arith.constant 0 : index
    %c0_13 = arith.constant 0 : index
    %c0_14 = arith.constant 0 : index
    %c0_15 = arith.constant 0 : index
    %27 = vector.load %arg6[%c0_12, %c0_13, %c0_14, %c0_15] : memref<1x8x8x16xbf16, #tpu.memory_space<vmem>>, vector<1x8x8x16xbf16>
    tpu.vector_store %arg6[%c0_12, %c0_13, %c0_14, %c0_15], %26 {strides = array<i32>} : memref<1x8x8x16xbf16, #tpu.memory_space<vmem>>, vector<1x8x8x16xbf16>,
    return
  }
  func.func @transform_0(%arg0: i32, %arg1: i32) -> (i32, i32, i32, i32) {
    %c0_i32 = arith.constant 0 : i32
    %c0_i32_0 = arith.constant 0 : i32
    %c0_i32_1 = arith.constant 0 : i32
    return %arg0, %arg1, %c0_i32, %c0_i32_0 : i32, i32, i32, i32
  }
  func.func @transform_1(%arg0: i32, %arg1: i32) -> (i32, i32, i32, i32) {
    %c1_i32 = arith.constant 1 : i32
    %0 = arith.addi %arg1, %c1_i32 : i32
    %c16_i32 = arith.constant 16 : i32
    %1 = arith.muli %c16_i32, %0 : i32
    %c0_i32 = arith.constant 0 : i32
    %c0_i32_0 = arith.constant 0 : i32
    %c0_i32_1 = arith.constant 0 : i32
    return %arg0, %1, %c0_i32, %c0_i32_0 : i32, i32, i32, i32
  }
  func.func @transform_2(%arg0: i32, %arg1: i32) -> (i32, i32) {
    %c0_i32 = arith.constant 0 : i32
    %c0_i32_0 = arith.constant 0 : i32
    %c0_i32_1 = arith.constant 0 : i32
    return %c0_i32, %c0_i32_0 : i32, i32
  }
  func.func @transform_3(%arg0: i32, %arg1: i32) -> (i32, i32) {
    %c0_i32 = arith.constant 0 : i32
    %c0_i32_0 = arith.constant 0 : i32
    %c0_i32_1 = arith.constant 0 : i32
    return %c0_i32, %c0_i32_0 : i32, i32
  }
  func.func @transform_4(%arg0: i32, %arg1: i32) -> (i32, i32, i32, i32) {
    %c0_i32 = arith.constant 0 : i32
    %c0_i32_0 = arith.constant 0 : i32
    %c0_i32_1 = arith.constant 0 : i32
    return %arg0, %arg1, %c0_i32, %c0_i32_0 : i32, i32, i32, i32
  }
}

module attributes {stable_mosaic.version = 11 : i64} {
  func.func @_conv3x3s2_kernel(%arg0: i32, %arg1: i32, %arg2: memref<1x8x5x32xbf16, #tpu.memory_space<vmem>>, %arg3: memref<1x1x5x32xbf16, #tpu.memory_space<vmem>>, %arg4: memref<144x32xbf16, #tpu.memory_space<vmem>>, %arg5: memref<1x32xf32, #tpu.memory_space<vmem>>, %arg6: memref<1x4x4x32xbf16, #tpu.memory_space<vmem>>) attributes {dimension_semantics = [#tpu.dimension_semantics<parallel>, #tpu.dimension_semantics<parallel>], iteration_bounds = array<i64: 2, 1>, scalar_prefetch = 0 : i64, scratch_operands = 0 : i64, tpu.core_type = #tpu.core_type<tc>, window_params = [{transform_indices = @transform_0, window_bounds = array<i64: 1, 8, 5, 32>}, {transform_indices = @transform_1, window_bounds = array<i64: 1, 1, 5, 32>}, {pipeline_mode = #tpu.pipeline_mode<synchronous>, transform_indices = @transform_2, window_bounds = array<i64: 144, 32>}, {pipeline_mode = #tpu.pipeline_mode<synchronous>, transform_indices = @transform_3, window_bounds = array<i64: 1, 32>}, {transform_indices = @transform_4, window_bounds = array<i64: 1, 4, 4, 32>}]} {
    %c0 = arith.constant 0 : index
    %c0_0 = arith.constant 0 : index
    %c0_1 = arith.constant 0 : index
    %c0_2 = arith.constant 0 : index
    %0 = vector.load %arg2[%c0, %c0_0, %c0_1, %c0_2] : memref<1x8x5x32xbf16, #tpu.memory_space<vmem>>, vector<1x8x5x32xbf16>
    %1 = vector.shape_cast %0 : vector<1x8x5x32xbf16> to vector<1x4x2x5x32xbf16>
    %c0_3 = arith.constant 0 : index
    %c0_4 = arith.constant 0 : index
    %c0_5 = arith.constant 0 : index
    %c0_6 = arith.constant 0 : index
    %2 = vector.load %arg3[%c0_3, %c0_4, %c0_5, %c0_6] : memref<1x1x5x32xbf16, #tpu.memory_space<vmem>>, vector<1x1x5x32xbf16>
    %3 = vector.extract_strided_slice %1 {offsets = [0, 0, 0, 0, 0], sizes = [1, 4, 1, 5, 32], strides = [1, 1, 1, 1, 1]} : vector<1x4x2x5x32xbf16> to vector<1x4x1x5x32xbf16>
    %4 = vector.shape_cast %3 : vector<1x4x1x5x32xbf16> to vector<1x4x5x32xbf16>
    %5 = vector.extract_strided_slice %4 {offsets = [0, 0, 0, 0], sizes = [1, 4, 4, 32], strides = [1, 1, 1, 1]} : vector<1x4x5x32xbf16> to vector<1x4x4x32xbf16>
    %6 = vector.extract_strided_slice %4 {offsets = [0, 0, 1, 0], sizes = [1, 4, 4, 16], strides = [1, 1, 1, 1]} : vector<1x4x5x32xbf16> to vector<1x4x4x16xbf16>
    %7 = vector.extract_strided_slice %1 {offsets = [0, 0, 1, 0, 0], sizes = [1, 4, 1, 5, 32], strides = [1, 1, 1, 1, 1]} : vector<1x4x2x5x32xbf16> to vector<1x4x1x5x32xbf16>
    %8 = vector.shape_cast %7 : vector<1x4x1x5x32xbf16> to vector<1x4x5x32xbf16>
    %9 = vector.extract_strided_slice %8 {offsets = [0, 0, 0, 0], sizes = [1, 4, 4, 32], strides = [1, 1, 1, 1]} : vector<1x4x5x32xbf16> to vector<1x4x4x32xbf16>
    %10 = vector.extract_strided_slice %8 {offsets = [0, 0, 1, 0], sizes = [1, 4, 4, 16], strides = [1, 1, 1, 1]} : vector<1x4x5x32xbf16> to vector<1x4x4x16xbf16>
    %11 = vector.extract_strided_slice %1 {offsets = [0, 1, 0, 0, 0], sizes = [1, 3, 1, 5, 32], strides = [1, 1, 1, 1, 1]} : vector<1x4x2x5x32xbf16> to vector<1x3x1x5x32xbf16>
    %12 = vector.shape_cast %11 : vector<1x3x1x5x32xbf16> to vector<1x3x5x32xbf16>
    %13 = tpu.concatenate %12, %2 in 1 : vector<1x3x5x32xbf16>, vector<1x1x5x32xbf16> -> vector<1x4x5x32xbf16>
    %14 = vector.extract_strided_slice %13 {offsets = [0, 0, 0, 0], sizes = [1, 4, 4, 32], strides = [1, 1, 1, 1]} : vector<1x4x5x32xbf16> to vector<1x4x4x32xbf16>
    %15 = vector.extract_strided_slice %13 {offsets = [0, 0, 1, 0], sizes = [1, 4, 4, 16], strides = [1, 1, 1, 1]} : vector<1x4x5x32xbf16> to vector<1x4x4x16xbf16>
    %16 = tpu.concatenate %5, %6, %9, %10, %14, %15 in 3 : vector<1x4x4x32xbf16>, vector<1x4x4x16xbf16>, vector<1x4x4x32xbf16>, vector<1x4x4x16xbf16>, vector<1x4x4x32xbf16>, vector<1x4x4x16xbf16> -> vector<1x4x4x144xbf16>
    %17 = vector.shape_cast %16 : vector<1x4x4x144xbf16> to vector<16x144xbf16>
    %c0_7 = arith.constant 0 : index
    %c0_8 = arith.constant 0 : index
    %18 = vector.load %arg4[%c0_7, %c0_8] : memref<144x32xbf16, #tpu.memory_space<vmem>>, vector<144x32xbf16>
    %cst = arith.constant dense<0.000000e+00> : vector<16x32xf32>
    %19 = tpu.matmul %17, %18, %cst {dimension_numbers = #tpu.dot_dimension_numbers<[1], [0], [0], [1], [0, 0, 1, 1], [], []>} : vector<16x144xbf16>, vector<144x32xbf16>, vector<16x32xf32> -> vector<16x32xf32>
    %c0_9 = arith.constant 0 : index
    %c0_10 = arith.constant 0 : index
    %20 = vector.load %arg5[%c0_9, %c0_10] : memref<1x32xf32, #tpu.memory_space<vmem>>, vector<1x32xf32>
    %21 = vector.broadcast %20 : vector<1x32xf32> to vector<16x32xf32>
    %22 = arith.addf %19, %21 : vector<16x32xf32>
    %cst_11 = arith.constant 0.000000e+00 : f32
    %23 = vector.broadcast %cst_11 : f32 to vector<16x32xf32>
    %24 = arith.maximumf %22, %23 : vector<16x32xf32>
    %25 = vector.shape_cast %24 : vector<16x32xf32> to vector<1x4x4x32xf32>
    %26 = arith.truncf %25 : vector<1x4x4x32xf32> to vector<1x4x4x32xbf16>
    %c0_12 = arith.constant 0 : index
    %c0_13 = arith.constant 0 : index
    %c0_14 = arith.constant 0 : index
    %c0_15 = arith.constant 0 : index
    %27 = vector.load %arg6[%c0_12, %c0_13, %c0_14, %c0_15] : memref<1x4x4x32xbf16, #tpu.memory_space<vmem>>, vector<1x4x4x32xbf16>
    tpu.vector_store %arg6[%c0_12, %c0_13, %c0_14, %c0_15], %26 {strides = array<i32>} : memref<1x4x4x32xbf16, #tpu.memory_space<vmem>>, vector<1x4x4x32xbf16>,
    return
  }
  func.func @transform_0(%arg0: i32, %arg1: i32) -> (i32, i32, i32, i32) {
    %c0_i32 = arith.constant 0 : i32
    %c0_i32_0 = arith.constant 0 : i32
    %c0_i32_1 = arith.constant 0 : i32
    return %arg0, %arg1, %c0_i32, %c0_i32_0 : i32, i32, i32, i32
  }
  func.func @transform_1(%arg0: i32, %arg1: i32) -> (i32, i32, i32, i32) {
    %c1_i32 = arith.constant 1 : i32
    %0 = arith.addi %arg1, %c1_i32 : i32
    %c8_i32 = arith.constant 8 : i32
    %1 = arith.muli %c8_i32, %0 : i32
    %c0_i32 = arith.constant 0 : i32
    %c0_i32_0 = arith.constant 0 : i32
    %c0_i32_1 = arith.constant 0 : i32
    return %arg0, %1, %c0_i32, %c0_i32_0 : i32, i32, i32, i32
  }
  func.func @transform_2(%arg0: i32, %arg1: i32) -> (i32, i32) {
    %c0_i32 = arith.constant 0 : i32
    %c0_i32_0 = arith.constant 0 : i32
    %c0_i32_1 = arith.constant 0 : i32
    return %c0_i32, %c0_i32_0 : i32, i32
  }
  func.func @transform_3(%arg0: i32, %arg1: i32) -> (i32, i32) {
    %c0_i32 = arith.constant 0 : i32
    %c0_i32_0 = arith.constant 0 : i32
    %c0_i32_1 = arith.constant 0 : i32
    return %c0_i32, %c0_i32_0 : i32, i32
  }
  func.func @transform_4(%arg0: i32, %arg1: i32) -> (i32, i32, i32, i32) {
    %c0_i32 = arith.constant 0 : i32
    %c0_i32_0 = arith.constant 0 : i32
    %c0_i32_1 = arith.constant 0 : i32
    return %arg0, %arg1, %c0_i32, %c0_i32_0 : i32, i32, i32, i32
  }
}

module attributes {stable_mosaic.version = 11 : i64} {
  func.func @_conv3x3s2_kernel(%arg0: i32, %arg1: i32, %arg2: memref<1x4x3x64xbf16, #tpu.memory_space<vmem>>, %arg3: memref<1x1x3x64xbf16, #tpu.memory_space<vmem>>, %arg4: memref<288x64xbf16, #tpu.memory_space<vmem>>, %arg5: memref<1x64xf32, #tpu.memory_space<vmem>>, %arg6: memref<1x2x2x64xbf16, #tpu.memory_space<vmem>>) attributes {dimension_semantics = [#tpu.dimension_semantics<parallel>, #tpu.dimension_semantics<parallel>], iteration_bounds = array<i64: 2, 1>, scalar_prefetch = 0 : i64, scratch_operands = 0 : i64, tpu.core_type = #tpu.core_type<tc>, window_params = [{transform_indices = @transform_0, window_bounds = array<i64: 1, 4, 3, 64>}, {transform_indices = @transform_1, window_bounds = array<i64: 1, 1, 3, 64>}, {pipeline_mode = #tpu.pipeline_mode<synchronous>, transform_indices = @transform_2, window_bounds = array<i64: 288, 64>}, {pipeline_mode = #tpu.pipeline_mode<synchronous>, transform_indices = @transform_3, window_bounds = array<i64: 1, 64>}, {transform_indices = @transform_4, window_bounds = array<i64: 1, 2, 2, 64>}]} {
    %c0 = arith.constant 0 : index
    %c0_0 = arith.constant 0 : index
    %c0_1 = arith.constant 0 : index
    %c0_2 = arith.constant 0 : index
    %0 = vector.load %arg2[%c0, %c0_0, %c0_1, %c0_2] : memref<1x4x3x64xbf16, #tpu.memory_space<vmem>>, vector<1x4x3x64xbf16>
    %1 = vector.shape_cast %0 : vector<1x4x3x64xbf16> to vector<1x2x2x3x64xbf16>
    %c0_3 = arith.constant 0 : index
    %c0_4 = arith.constant 0 : index
    %c0_5 = arith.constant 0 : index
    %c0_6 = arith.constant 0 : index
    %2 = vector.load %arg3[%c0_3, %c0_4, %c0_5, %c0_6] : memref<1x1x3x64xbf16, #tpu.memory_space<vmem>>, vector<1x1x3x64xbf16>
    %3 = vector.extract_strided_slice %1 {offsets = [0, 0, 0, 0, 0], sizes = [1, 2, 1, 3, 64], strides = [1, 1, 1, 1, 1]} : vector<1x2x2x3x64xbf16> to vector<1x2x1x3x64xbf16>
    %4 = vector.shape_cast %3 : vector<1x2x1x3x64xbf16> to vector<1x2x3x64xbf16>
    %5 = vector.extract_strided_slice %4 {offsets = [0, 0, 0, 0], sizes = [1, 2, 2, 64], strides = [1, 1, 1, 1]} : vector<1x2x3x64xbf16> to vector<1x2x2x64xbf16>
    %6 = vector.extract_strided_slice %4 {offsets = [0, 0, 1, 0], sizes = [1, 2, 2, 32], strides = [1, 1, 1, 1]} : vector<1x2x3x64xbf16> to vector<1x2x2x32xbf16>
    %7 = vector.extract_strided_slice %1 {offsets = [0, 0, 1, 0, 0], sizes = [1, 2, 1, 3, 64], strides = [1, 1, 1, 1, 1]} : vector<1x2x2x3x64xbf16> to vector<1x2x1x3x64xbf16>
    %8 = vector.shape_cast %7 : vector<1x2x1x3x64xbf16> to vector<1x2x3x64xbf16>
    %9 = vector.extract_strided_slice %8 {offsets = [0, 0, 0, 0], sizes = [1, 2, 2, 64], strides = [1, 1, 1, 1]} : vector<1x2x3x64xbf16> to vector<1x2x2x64xbf16>
    %10 = vector.extract_strided_slice %8 {offsets = [0, 0, 1, 0], sizes = [1, 2, 2, 32], strides = [1, 1, 1, 1]} : vector<1x2x3x64xbf16> to vector<1x2x2x32xbf16>
    %11 = vector.extract_strided_slice %1 {offsets = [0, 1, 0, 0, 0], sizes = [1, 1, 1, 3, 64], strides = [1, 1, 1, 1, 1]} : vector<1x2x2x3x64xbf16> to vector<1x1x1x3x64xbf16>
    %12 = vector.shape_cast %11 : vector<1x1x1x3x64xbf16> to vector<1x1x3x64xbf16>
    %13 = tpu.concatenate %12, %2 in 1 : vector<1x1x3x64xbf16>, vector<1x1x3x64xbf16> -> vector<1x2x3x64xbf16>
    %14 = vector.extract_strided_slice %13 {offsets = [0, 0, 0, 0], sizes = [1, 2, 2, 64], strides = [1, 1, 1, 1]} : vector<1x2x3x64xbf16> to vector<1x2x2x64xbf16>
    %15 = vector.extract_strided_slice %13 {offsets = [0, 0, 1, 0], sizes = [1, 2, 2, 32], strides = [1, 1, 1, 1]} : vector<1x2x3x64xbf16> to vector<1x2x2x32xbf16>
    %16 = tpu.concatenate %5, %6, %9, %10, %14, %15 in 3 : vector<1x2x2x64xbf16>, vector<1x2x2x32xbf16>, vector<1x2x2x64xbf16>, vector<1x2x2x32xbf16>, vector<1x2x2x64xbf16>, vector<1x2x2x32xbf16> -> vector<1x2x2x288xbf16>
    %17 = vector.shape_cast %16 : vector<1x2x2x288xbf16> to vector<4x288xbf16>
    %c0_7 = arith.constant 0 : index
    %c0_8 = arith.constant 0 : index
    %18 = vector.load %arg4[%c0_7, %c0_8] : memref<288x64xbf16, #tpu.memory_space<vmem>>, vector<288x64xbf16>
    %cst = arith.constant dense<0.000000e+00> : vector<4x64xf32>
    %19 = tpu.matmul %17, %18, %cst {dimension_numbers = #tpu.dot_dimension_numbers<[1], [0], [0], [1], [0, 0, 1, 1], [], []>} : vector<4x288xbf16>, vector<288x64xbf16>, vector<4x64xf32> -> vector<4x64xf32>
    %c0_9 = arith.constant 0 : index
    %c0_10 = arith.constant 0 : index
    %20 = vector.load %arg5[%c0_9, %c0_10] : memref<1x64xf32, #tpu.memory_space<vmem>>, vector<1x64xf32>
    %21 = vector.broadcast %20 : vector<1x64xf32> to vector<4x64xf32>
    %22 = arith.addf %19, %21 : vector<4x64xf32>
    %cst_11 = arith.constant 0.000000e+00 : f32
    %23 = vector.broadcast %cst_11 : f32 to vector<4x64xf32>
    %24 = arith.maximumf %22, %23 : vector<4x64xf32>
    %25 = vector.shape_cast %24 : vector<4x64xf32> to vector<1x2x2x64xf32>
    %26 = arith.truncf %25 : vector<1x2x2x64xf32> to vector<1x2x2x64xbf16>
    %c0_12 = arith.constant 0 : index
    %c0_13 = arith.constant 0 : index
    %c0_14 = arith.constant 0 : index
    %c0_15 = arith.constant 0 : index
    %27 = vector.load %arg6[%c0_12, %c0_13, %c0_14, %c0_15] : memref<1x2x2x64xbf16, #tpu.memory_space<vmem>>, vector<1x2x2x64xbf16>
    tpu.vector_store %arg6[%c0_12, %c0_13, %c0_14, %c0_15], %26 {strides = array<i32>} : memref<1x2x2x64xbf16, #tpu.memory_space<vmem>>, vector<1x2x2x64xbf16>,
    return
  }
  func.func @transform_0(%arg0: i32, %arg1: i32) -> (i32, i32, i32, i32) {
    %c0_i32 = arith.constant 0 : i32
    %c0_i32_0 = arith.constant 0 : i32
    %c0_i32_1 = arith.constant 0 : i32
    return %arg0, %arg1, %c0_i32, %c0_i32_0 : i32, i32, i32, i32
  }
  func.func @transform_1(%arg0: i32, %arg1: i32) -> (i32, i32, i32, i32) {
    %c1_i32 = arith.constant 1 : i32
    %0 = arith.addi %arg1, %c1_i32 : i32
    %c4_i32 = arith.constant 4 : i32
    %1 = arith.muli %c4_i32, %0 : i32
    %c0_i32 = arith.constant 0 : i32
    %c0_i32_0 = arith.constant 0 : i32
    %c0_i32_1 = arith.constant 0 : i32
    return %arg0, %1, %c0_i32, %c0_i32_0 : i32, i32, i32, i32
  }
  func.func @transform_2(%arg0: i32, %arg1: i32) -> (i32, i32) {
    %c0_i32 = arith.constant 0 : i32
    %c0_i32_0 = arith.constant 0 : i32
    %c0_i32_1 = arith.constant 0 : i32
    return %c0_i32, %c0_i32_0 : i32, i32
  }
  func.func @transform_3(%arg0: i32, %arg1: i32) -> (i32, i32) {
    %c0_i32 = arith.constant 0 : i32
    %c0_i32_0 = arith.constant 0 : i32
    %c0_i32_1 = arith.constant 0 : i32
    return %c0_i32, %c0_i32_0 : i32, i32
  }
  func.func @transform_4(%arg0: i32, %arg1: i32) -> (i32, i32, i32, i32) {
    %c0_i32 = arith.constant 0 : i32
    %c0_i32_0 = arith.constant 0 : i32
    %c0_i32_1 = arith.constant 0 : i32
    return %arg0, %arg1, %c0_i32, %c0_i32_0 : i32, i32, i32, i32
  }
}

</mosaic_0001>

<bundles_post_ra>
// kernel: backbone_base_forward.3
= control target key start
LH: loop header
LB: loop body
LE: loop exit
PB: predicated region body
PF: predicated region fallthrough
CT: control target
= control target key end

     0   :  { %s1216_s15 = smov 0   ;;  %s1218_s16 = smov 0   ;;  %s1488_s0 = inlined_call_operand.vmem [shape: bf16[2,18,9,8], index: 0, kind: input, shape index: {}, may-alias: {0,1}]   ;;  %s1489_s1 = inlined_call_operand.vmem [shape: bf16[2,18,9,8], index: 1, kind: input, shape index: {}, may-alias: {0,1}]   ;;  %s1490_s2 = inlined_call_operand.vmem [shape: bf16[36,16], index: 2, kind: input, shape index: {}]   ;;  %s1491_s3 = inlined_call_operand.vmem [shape: f32[1,16], index: 3, kind: input, shape index: {}]   ;;  %s1492_s4 = inlined_call_operand.vmem [shape: bf16[2,8,8,16], index: 4, kind: output, shape index: {}]  }
   0x1   :  { %s1220_s17 = smov 0  }
   0x2 LB: > { %s26_s18 = sadd.s32 1, %s1180_s16  ;;  %p1010_p0 = scmp.ge.s32.totalorder %s1184_s17, 1  ;;  %s1184_s17 = sphi %s1220_s17, %s14_s17   ;;  %s1180_s16 = sphi %s1218_s16, %s1494_s16   ;;  %s1176_s15 = sphi %s1216_s15, %s1493_s15  }
   0x3   : > { %p28_p1 = scmp.ge.s32.totalorder %s26_s18, 2  ;;  %p218_p2 = scmp.lt.s32.totalorder %s1184_s17, 3 }
   0x5   : > { %s1496_s18 = smov (%p28_p1, %s26_s18), 0  ;;  %p219_p3 = pnand %p1010_p0, %p218_p2 }
   0x6   : > { %p275_p4 = scmp.lt.s32.totalorder (!%p219_p3), %s1176_s15, 1  ;;  %s1186_s23 = smov (!%p219_p3), 12   ;;  %vm801_vm0 = vcmask (!%p219_p3), 1041408   ;;  %vm648_vm1 = vcmask (!%p219_p3), 64512   ;;  %vm673_vm2 = vcmask (!%p219_p3), 97280   ;;  %vm690_vm3 = vcmask (!%p219_p3), 162816  }
   0x7   : > { %222 = sbr.rel (%p219_p3) target bundleno = 441 (0x1b9), region = 36  ;;  %s1187_s24 = smov (!%p219_p3), 8   ;;  %vm707_vm4 = vcmask (!%p219_p3), 195584   ;;  %vm724_vm5 = vcmask (!%p219_p3), 261120   ;;  %vm788_vm6 = vcmask (!%p219_p3), 293888   ;;  %vm886_vm7 = vcmask (!%p219_p3), 125952  }
   0x8   : > { %s1188_s25 = smov (!%p219_p3), 20   ;;  %s1189_s27 = smov (!%p219_p3), 24  }
   0x9   : > { %s1190_s11 = smov (!%p219_p3), 32  }
   0xe   : > { %s1498_s15 = smov (!%p275_p4, %s1176_s15), 1 }
   0xf   : > { %s1094_s19 = smul.u32 144, %s1498_s15  ;;  %s1064_s14 = sshll.u32 %s1498_s15, 5 }
  0x10   : > { %s1461_s21 = scalar_lea.vmem %s1492_s4, %s1064_s14 }
  0x11   : > { %s1242_s22 = scalar_lea.vmem %s1488_s0, %s1094_s19  ;;  %s1063_s26 = sadd.s32 128, %s1094_s19 }
  0x12   : > { %v1245_v0 = vld [vmem:[%s1242_s22 + $0x18] sm:$0xf]  ;;  %v1248_v1 = vld [vmem:[%s1242_s22 + $0x8] sm:$0xf]  ;;  %v1255_v4 = vld [vmem:[%s1242_s22 + $0x40] sm:$0xf]  ;;  %s300_s6 = scalar_lea.vmem %s1489_s1, %s1063_s26 }
  0x13   : > { %v1024_v2 = vcombine.low %v1245_v0, %v1245_v0  ;;  %v1023_v3 = vcombine.low %v1248_v1, %v1248_v1  ;;  %v331_v5 = vld [vmem:[%s1242_s22 + $0x44] sm:$0x1]  ;;  %v1260_v7 = vld [vmem:[%s1242_s22] sm:$0xf]  ;;  %v1264_v9 = vld [vmem:[%s1242_s22 + $0x50] sm:$0xf] }
  0x14   : > { %v1019_v6 = vcombine.low %v1255_v4, %v331_v5  ;;  %v315_v8 = vld [vmem:[%s1242_s22 + $0x4] sm:$0x1]  ;;  %v335_v11 = vld [vmem:[%s1242_s22 + $0x54] sm:$0x1]  ;;  %v1271_v12 = vld [vmem:[%s1242_s22 + $0x10] sm:$0xf] }
  0x15   : > { %486 = vrot.lane.b32.xlu1 %v1024_v2, %s1186_s23  ;;  %484 = vrot.lane.b32.xlu0 %v1023_v3, %s1186_s23  ;;  %v1015_v10 = vcombine.low %v1260_v7, %v315_v8  ;;  %v319_v15 = vld [vmem:[%s1242_s22 + $0x14] sm:$0x1]  ;;  %v1020_v18 = vcombine.low %v1264_v9, %v335_v11  ;;  %v1277_v20 = vld [vmem:[%s1242_s22 + $0x30] sm:$0xf] }
  0x16   : > { %v417_v13 = vshrl.u32 %v1019_v6, 16  ;;  %v419_v14 = vshll.u32 %v1019_v6, 16  ;;  %v1016_v19 = vcombine.low %v1271_v12, %v319_v15  ;;  %v327_v21 = vld [vmem:[%s1242_s22 + $0x34] sm:$0x1]  ;;  %v1282_v24 = vld [vmem:[%s1242_s22 + $0x20] sm:$0xf] }
  0x17   : > { %v389_v16 = vshrl.u32 %v1015_v10, 16  ;;  %v391_v17 = vshll.u32 %v1015_v10, 16  ;;  %v1018_v23 = vcombine.low %v1277_v20, %v327_v21  ;;  %v323_v25 = vld [vmem:[%s1242_s22 + $0x24] sm:$0x1]  ;;  %v424_v27 = vshrl.u32 %v1020_v18, 16 }
  0x18   : > { %v421_v22 = vrot.slane %v419_v14, 1  ;;  %v426_v28 = vshll.u32 %v1020_v18, 16  ;;  %v1286_v29 = vld [vmem:[%s1242_s22 + $0x70] sm:$0xf]  ;;  %v396_v31 = vshrl.u32 %v1016_v19, 16  ;;  %v398_v32 = vshll.u32 %v1016_v19, 16 }
  0x19   : > { %v393_v26 = vrot.slane %v391_v17, 1  ;;  %v412_v33 = vshll.u32 %v1018_v23, 16  ;;  %v343_v34 = vld [vmem:[%s1242_s22 + $0x74] sm:$0x1]  ;;  %v1017_v37 = vcombine.low %v1282_v24, %v323_v25  ;;  %v1294_v39 = vld [vmem:[%s1242_s22 + $0x60] sm:$0xf] }
  0x1a   : > { %v1288_v30 = vor.u32 %v421_v22, %v417_v13  ;;  %v428_v36 = vrot.slane %v426_v28, 1  ;;  %v1022_v38 = vcombine.low %v1286_v29, %v343_v34  ;;  %v339_v40 = vld [vmem:[%s1242_s22 + $0x64] sm:$0x1]  ;;  %v400_v41 = vrot.slane %v398_v32, 1  ;;  %v321_v58 = vld [vmem:[%s1242_s22 + $0x1c] sm:$0x1] }
  0x1b   : > { %v394_v35 = vor.u32 %v393_v26, %v389_v16  ;;  %v410_v42 = vshrl.u32 %v1018_v23, 16  ;;  %v414_v43 = vrot.slane %v412_v33, 1  ;;  %v1021_v44 = vcombine.low %v1294_v39, %v339_v40  ;;  %v336_v61 = vld [vmem:[%s1242_s22 + $0x58] sm:$0xf]  ;;  %v317_v62 = vld [vmem:[%s1242_s22 + $0xc] sm:$0x1] }
  0x1c   : > { %452 = vrot.lane.b32.xlu1 %v1288_v30, %s1187_s24  ;;  %v1301_v45 = vor.u32 %v428_v36, %v424_v27  ;;  %v403_v46 = vshrl.u32 %v1017_v37, 16  ;;  %v405_v47 = vshll.u32 %v1017_v37, 16  ;;  %v1303_v48 = vor.u32 %v400_v41, %v396_v31  ;;  %v332_v63 = vld [vmem:[%s1242_s22 + $0x48] sm:$0xf]  ;;  %v337_v6 = vld [vmem:[%s1242_s22 + $0x5c] sm:$0x1] }
  0x1d   : > { %444 = vrot.lane.b32.xlu0 %v394_v35, %s1187_s24  ;;  %v440_v49 = vshll.u32 %v1022_v38, 16  ;;  %v433_v51 = vshll.u32 %v1021_v44, 16  ;;  %v1307_v52 = vor.u32 %v414_v43, %v410_v42  ;;  %v438_v53 = vshrl.u32 %v1022_v38, 16  ;;  %v328_v10 = vld [vmem:[%s1242_s22 + $0x38] sm:$0xf] }
  0x1e   : > { %v407_v50 = vrot.slane %v405_v47, 1  ;;  %v431_v56 = vshrl.u32 %v1021_v44, 16  ;;  %v1032_v2 = vcombine.low %v1245_v0, %v321_v58  ;;  %v1028_v3 = vcombine.low %v336_v61, %v336_v61  ;;  %v333_v11 = vld [vmem:[%s1242_s22 + $0x4c] sm:$0x1]  ;;  %v324_v13 = vld [vmem:[%s1242_s22 + $0x28] sm:$0xf] }
  0x1f   : > { %v442_v54 = vrot.slane %v440_v49, 1  ;;  %v435_v57 = vrot.slane %v433_v51, 1  ;;  %v1031_v5 = vcombine.low %v1248_v1, %v317_v62  ;;  %v1027_v8 = vcombine.low %v332_v63, %v332_v63  ;;  %v329_v1 = vld [vmem:[%s1242_s22 + $0x3c] sm:$0x1]  ;;  %v344_v19 = vld [vmem:[%s1242_s22 + $0x78] sm:$0xf] }
  0x20   : > { %454 = vrot.lane.b32.xlu1 %v1301_v45, %s1187_s24  ;;  %v1311_v55 = vor.u32 %v407_v50, %v403_v46  ;;  %v534_v14 = vshll.u32 %v1032_v2, 16  ;;  %v1036_v0 = vcombine.low %v336_v61, %v337_v6  ;;  %v1026_v15 = vcombine.low %v328_v10, %v328_v10  ;;  %v325_v21 = vld [vmem:[%s1242_s22 + $0x2c] sm:$0x1]  ;;  %v340_v22 = vld [vmem:[%s1242_s22 + $0x68] sm:$0xf] }
  0x21   : > { %446 = vrot.lane.b32.xlu0 %v1303_v48, %s1187_s24  ;;  %v1316_v59 = vor.u32 %v442_v54, %v438_v53  ;;  %v1320_v60 = vor.u32 %v435_v57, %v431_v56  ;;  %v527_v16 = vshll.u32 %v1031_v5, 16  ;;  %v1035_v17 = vcombine.low %v332_v63, %v333_v11  ;;  %v345_v28 = vld [vmem:[%s1242_s22 + $0x7c] sm:$0x1]  ;;  %v341_v34 = vld [vmem:[%s1242_s22 + $0x6c] sm:$0x1] }
  0x22   : > { %v1025_v18 = vcombine.low %v324_v13, %v324_v13  ;;  %v532_v23 = vshrl.u32 %v1032_v2, 16  ;;  %v536_v25 = vrot.slane %v534_v14, 1  ;;  %v525_v26 = vshrl.u32 %v1031_v5, 16 }
  0x23   : > { %v1034_v27 = vcombine.low %v328_v10, %v329_v1  ;;  %v1030_v31 = vcombine.low %v344_v19, %v344_v19  ;;  %v562_v32 = vshll.u32 %v1036_v0, 16  ;;  %v1033_v33 = vcombine.low %v324_v13, %v325_v21  ;;  %v1160_v1 = vld [vmem:[%s1490_s2 + $0x8] sm:$0xff]  }
  0x24   : > { %450 = vrot.lane.b32.xlu1 %v1307_v52, %s1187_s24  ;;  %v1029_v35 = vcombine.low %v340_v22, %v340_v22  ;;  %v529_v36 = vrot.slane %v527_v16, 1  ;;  %v555_v37 = vshll.u32 %v1035_v17, 16  ;;  %v1038_v38 = vcombine.low %v344_v19, %v345_v28  ;;  %v346_v19 = vld [vmem:[%s300_s6] sm:$0xf] }
  0x25   : > { %448 = vrot.lane.b32.xlu0 %v1311_v55, %s1187_s24  ;;  %v537_v40 = vor.u32 %v536_v25, %v532_v23  ;;  %v1037_v41 = vcombine.low %v340_v22, %v341_v34  ;;  %v560_v42 = vshrl.u32 %v1036_v0, 16  ;;  %v564_v43 = vrot.slane %v562_v32, 1  ;;  %v1161_v22 = vld [vmem:[%s1490_s2 + $0x10] ss:$0 sps:$4 sm:$0x33]  }
  0x26   : > { %v548_v44 = vshll.u32 %v1034_v27, 16  ;;  %v530_v46 = vor.u32 %v529_v36, %v525_v26  ;;  %v553_v47 = vshrl.u32 %v1035_v17, 16  ;;  %v557_v49 = vrot.slane %v555_v37, 1  ;;  %v347_v23 = vld [vmem:[%s300_s6 + $0x4] sm:$0x1] }
  0x27   : > { %v541_v50 = vshll.u32 %v1033_v33, 16  ;;  %v565_v51 = vor.u32 %v564_v43, %v560_v42  ;;  %v546_v53 = vshrl.u32 %v1034_v27, 16  ;;  %v576_v56 = vshll.u32 %v1038_v38, 16 }
  0x28   : > { %458 = vrot.lane.b32.xlu1 %v1316_v59, %s1187_s24  ;;  %v550_v54 = vrot.slane %v548_v44, 1  ;;  %v558_v57 = vor.u32 %v557_v49, %v553_v47  ;;  %v539_v58 = vshrl.u32 %v1033_v33, 16  ;;  %v569_v62 = vshll.u32 %v1037_v41, 16 }
  0x29   : > { %456 = vrot.lane.b32.xlu0 %v1320_v60, %s1187_s24  ;;  %v543_v61 = vrot.slane %v541_v50, 1  ;;  %v574_v2 = vshrl.u32 %v1038_v38, 16  ;;  %v567_v6 = vshrl.u32 %v1037_v41, 16  ;;  %v1040_v13 = vcombine.low %v1282_v24, %v1282_v24 }
  0x2a   : > { %v551_v63 = vor.u32 %v550_v54, %v546_v53  ;;  %v1039_v14 = vcombine.low %v1271_v12, %v1271_v12  ;;  %v1044_v0 = vcombine.low %v1294_v39, %v1294_v39  ;;  %v1043_v16 = vcombine.low %v1264_v9, %v1264_v9 }
  0x2b   : > { %v544_v5 = vor.u32 %v543_v61, %v539_v58  ;;  %v1042_v17 = vcombine.low %v1255_v4, %v1255_v4  ;;  %v1046_v21 = vcombine.low %v346_v19, %v346_v19  ;;  %v1045_v25 = vcombine.low %v1286_v29, %v1286_v29 }
  0x2c   : > { %494 = vrot.lane.b32.xlu1 %v1028_v3, %s1186_s23  ;;  %v578_v3 = vrot.slane %v576_v56, 1  ;;  %v803_v26 = vsel %vm801_vm0, %v1161_v22, 0  ;;  %v1047_v27 = vcombine.low %v346_v19, %v347_v23 }
  0x2d   : > { %492 = vrot.lane.b32.xlu0 %v1027_v8, %s1186_s23  ;;  %v571_v8 = vrot.slane %v569_v62, 1 }
  0x2e   : > { %v579_v10 = vor.u32 %v578_v3, %v574_v2  ;;  %v628_v28 = vshll.u32 %v1047_v27, 16 }
  0x2f   : > { %v572_v11 = vor.u32 %v571_v8, %v567_v6 }
  0x30   : > { %490 = vrot.lane.b32.xlu1 %v1026_v15, %s1186_s23  ;;  %v1159_v15 = vld [vmem:[%s1490_s2] sm:$0xff]   ;;  %v630_v32 = vrot.slane %v628_v28, 1 }
  0x31   : > { %488 = vrot.lane.b32.xlu0 %v1025_v18, %s1186_s23  ;;  %1072 = vmatprep.subr.bf16.mxu0 %v1159_v15  ;;  %v1041_v18 = vcombine.low %v1277_v20, %v1277_v20 }
  0x32   : > { %1086 = vmatprep.subr.bf16.mxu1 %v1159_v15  ;;  %1073 = vmatpush3.bf16.msra.mxu0 %v1159_v15 }
  0x33   : > { %1089 = vmatpush3.bf16.msra.mxu1 %v1159_v15  ;;  %1074 = vmatprep.subr.bf16.mxu0 %v1160_v1 }
  0x34   : > { %498 = vrot.lane.b32.xlu1 %v1030_v31, %s1186_s23  ;;  %1087 = vmatprep.subr.bf16.mxu1 %v1160_v1  ;;  %v626_v31 = vshrl.u32 %v1047_v27, 16 }
  0x35   : > { %496 = vrot.lane.b32.xlu0 %v1029_v35, %s1186_s23 }
  0x36   : > { %1075 = vmatpush3.bf16.msra.mxu0 %v1160_v1  ;;  %v631_v33 = vor.u32 %v630_v32, %v626_v31 }
  0x37   : > { %1090 = vmatpush3.bf16.msra.mxu1 %v1160_v1  ;;  %1092 = vmatprep.subr.msk.bf16.mxu0 %vm801_vm0, %v1161_v22 }
  0x38   : > { %582 = vrot.lane.b32.xlu1 %v537_v40, %s1188_s25  ;;  %1093 = vmatprep.subr.msk.bf16.mxu1 %vm801_vm0, %v1161_v22 }
  0x39   : > { %580 = vrot.lane.b32.xlu0 %v530_v46, %s1188_s25 }
  0x3a   : > { %1077 = vmatpush3.bf16.msra.mxu0 %v803_v26 }
  0x3b   : > { %1091 = vmatpush3.bf16.msra.mxu1 %v803_v26 }
  0x3c   : > { %590 = vrot.lane.b32.xlu1 %v565_v51, %s1188_s25 }
  0x3d   : > { %588 = vrot.lane.b32.xlu0 %v558_v57, %s1188_s25 }
  0x40   : > { %586 = vrot.lane.b32.xlu1 %v551_v63, %s1188_s25 }
  0x41   : > { %584 = vrot.lane.b32.xlu0 %v544_v5, %s1188_s25 }
  0x44   : > { %594 = vrot.lane.b32.xlu1 %v579_v10, %s1188_s25 }
  0x45   : > { %592 = vrot.lane.b32.xlu0 %v572_v11, %s1188_s25 }
  0x48   : > { %608 = vrot.lane.b32.xlu1 %v1040_v13, %s1189_s27 }
  0x49   : > { %606 = vrot.lane.b32.xlu0 %v1039_v14, %s1189_s27 }
  0x4c   : > { %616 = vrot.lane.b32.xlu1 %v1044_v0, %s1189_s27 }
  0x4d   : > { %614 = vrot.lane.b32.xlu0 %v1043_v16, %s1189_s27 }
  0x50   : > { %612 = vrot.lane.b32.xlu1 %v1042_v17, %s1189_s27 }
  0x51   : > { %610 = vrot.lane.b32.xlu0 %v1041_v18, %s1189_s27 }
  0x54   : > { %620 = vrot.lane.b32.xlu1 %v1046_v21, %s1189_s27 }
  0x55   : > { %618 = vrot.lane.b32.xlu0 %v1045_v25, %s1189_s27 }
  0x58   : > { %634 = vrot.lane.b32.xlu1 %v1311_v55, %s1190_s11 }
  0x59   : > { %632 = vrot.lane.b32.xlu0 %v1303_v48, %s1190_s11 }
  0x5c   : > { %642 = vrot.lane.b32.xlu1 %v1320_v60, %s1190_s11 }
  0x5d   : > { %640 = vrot.lane.b32.xlu0 %v1301_v45, %s1190_s11 }
  0x60   : > { %638 = vrot.lane.b32.xlu1 %v1288_v30, %s1190_s11 }
  0x61   : > { %636 = vrot.lane.b32.xlu0 %v1307_v52, %s1190_s11 }
  0x64   : > { %646 = vrot.lane.b32.xlu1 %v631_v33, %s1190_s11 }
  0x65   : > { %644 = vrot.lane.b32.xlu0 %v1316_v59, %s1190_s11 }
  0x87   : > { %v487_v34 = vpop.permute.xlu1 %486  ;;  %v485_v35 = vpop.permute.xlu0 %484 }
  0x8e   : > { %v453_v55 = vpop.permute.xlu1 %452 }
  0x8f   : > { %v445_v36 = vpop.permute.xlu0 %444  ;;  %v663_v17 = vsel %vm648_vm1, %v1255_v4, %v453_v55 }
  0x90   : > { %v651_v3 = vsel %vm648_vm1, %v1260_v7, %v445_v36 }
  0x91   : > { %v675_v11 = vsel %vm673_vm2, %v651_v3, %v485_v35 }
  0x92   : > { %v455_v37 = vpop.permute.xlu1 %454 }
  0x93   : > { %v447_v48 = vpop.permute.xlu0 %446  ;;  %v666_v7 = vsel %vm648_vm1, %v1264_v9, %v455_v37 }
  0x94   : > { %v654_v2 = vsel %vm648_vm1, %v1271_v12, %v447_v48 }
  0x95   : > { %v677_v8 = vsel %vm673_vm2, %v654_v2, %v487_v34 }
  0x96   : > { %v451_v38 = vpop.permute.xlu1 %450 }
  0x97   : > { %v449_v60 = vpop.permute.xlu0 %448  ;;  %v660_v26 = vsel %vm648_vm1, %v1277_v20, %v451_v38 }
  0x98   : > { %v657_v31 = vsel %vm648_vm1, %v1282_v24, %v449_v60 }
  0x9a   : > { %v1390_v40 = vpop.permute.xlu1 %458 }
  0x9b   : > { %v1392_v41 = vpop.permute.xlu0 %456  ;;  %v672_v48 = vsel %vm648_vm1, %v1286_v29, %v1390_v40 }
  0x9e   : > { %v495_v45 = vpop.permute.xlu1 %494 }
  0x9f   : > { %v493_v30 = vpop.permute.xlu0 %492  ;;  %v685_v1 = vsel %vm673_vm2, %v666_v7, %v495_v45  ;;  %v669_v45 = vsel %vm648_vm1, %v1294_v39, %v1392_v41 }
  0xa0   : > { %v683_v19 = vsel %vm673_vm2, %v663_v17, %v493_v30 }
  0xa2   : > { %v491_v42 = vpop.permute.xlu1 %490 }
  0xa3   : > { %v489_v43 = vpop.permute.xlu0 %488  ;;  %v681_v32 = vsel %vm673_vm2, %v660_v26, %v491_v42 }
  0xa4   : > { %v679_v34 = vsel %vm673_vm2, %v657_v31, %v489_v43 }
  0xa6   : > { %v1394_v52 = vpop.permute.xlu1 %498 }
  0xa7   : > { %v1396_v44 = vpop.permute.xlu0 %496  ;;  %v689_v30 = vsel %vm673_vm2, %v672_v48, %v1394_v52 }
  0xa8   : > { %v687_v29 = vsel %vm673_vm2, %v669_v45, %v1396_v44  ;;  %v1048_v44 = vld [vmem:[%s1491_s3] ss:$0 sm:$0xff] }
  0xaa   : > { %v583_v59 = vpop.permute.xlu1 %582 }
  0xab   : > { %v581_v46 = vpop.permute.xlu0 %580  ;;  %v694_v10 = vsel %vm690_vm3, %v677_v8, %v583_v59 }
  0xac   : > { %v692_v13 = vsel %vm690_vm3, %v675_v11, %v581_v46 }
  0xae   : > { %v591_v47 = vpop.permute.xlu1 %590 }
  0xaf   : > { %v589_v49 = vpop.permute.xlu0 %588  ;;  %v702_v21 = vsel %vm690_vm3, %v685_v1, %v591_v47 }
  0xb0   : > { %v700_v9 = vsel %vm690_vm3, %v683_v19, %v589_v49 }
  0xb2   : > { %v587_v50 = vpop.permute.xlu1 %586 }
  0xb3   : > { %v585_v51 = vpop.permute.xlu0 %584  ;;  %v698_v35 = vsel %vm690_vm3, %v681_v32, %v587_v50 }
  0xb4   : > { %v696_v20 = vsel %vm690_vm3, %v679_v34, %v585_v51 }
  0xb6   : > { %v595_v53 = vpop.permute.xlu1 %594 }
  0xb7   : > { %v593_v54 = vpop.permute.xlu0 %592  ;;  %v706_v40 = vsel %vm690_vm3, %v689_v30, %v595_v53 }
  0xb8   : > { %v704_v59 = vsel %vm690_vm3, %v687_v29, %v593_v54 }
  0xba   : > { %v609_v56 = vpop.permute.xlu1 %608 }
  0xbb   : > { %v607_v57 = vpop.permute.xlu0 %606  ;;  %v711_v14 = vsel %vm707_vm4, %v694_v10, %v609_v56 }
  0xbc   : > { %v709_v0 = vsel %vm707_vm4, %v692_v13, %v607_v57 }
  0xbe   : > { %v617_v58 = vpop.permute.xlu1 %616 }
  0xbf   : > { %v615_v61 = vpop.permute.xlu0 %614  ;;  %v719_v23 = vsel %vm707_vm4, %v702_v21, %v617_v58 }
  0xc0   : > { %v717_v4 = vsel %vm707_vm4, %v700_v9, %v615_v61 }
  0xc2   : > { %v613_v62 = vpop.permute.xlu1 %612 }
  0xc3   : > { %v611_v63 = vpop.permute.xlu0 %610  ;;  %v715_v36 = vsel %vm707_vm4, %v698_v35, %v613_v62 }
  0xc4   : > { %v713_v24 = vsel %vm707_vm4, %v696_v20, %v611_v63 }
  0xc6   : > { %v621_v5 = vpop.permute.xlu1 %620 }
  0xc7   : > { %v619_v6 = vpop.permute.xlu0 %618  ;;  %v723_v46 = vsel %vm707_vm4, %v706_v40, %v621_v5 }
  0xc8   : > { %v721_v49 = vsel %vm707_vm4, %v704_v59, %v619_v6 }
  0xca   : > { %v635_v12 = vpop.permute.xlu1 %634 }
  0xcb   : > { %v728_v15 = vsel %vm724_vm5, %v711_v14, %v635_v12  ;;  %v633_v16 = vpop.permute.xlu0 %632 }
  0xcc   : > { %v726_v18 = vsel %vm724_vm5, %v709_v0, %v633_v16 }
  0xcd   : > { %v1049_v22 = vcombine.low %v726_v18, %v728_v15 }
  0xce   : > { %v643_v25 = vpop.permute.xlu1 %642 }
  0xcf   : > { %v736_v27 = vsel %vm724_vm5, %v719_v23, %v643_v25  ;;  %1078 = vmatprep.mubr.msk.bf16.mxu0 %vm788_vm6, %v1049_v22  ;;  %v641_v28 = vpop.permute.xlu0 %640 }
  0xd0   : > { %v734_v33 = vsel %vm724_vm5, %v717_v4, %v641_v28 }
  0xd1   : > { %v1051_v55 = vcombine.low %v734_v33, %v736_v27 }
  0xd2   : > { %v639_v37 = vpop.permute.xlu1 %638 }
  0xd3   : > { %v732_v38 = vsel %vm724_vm5, %v715_v36, %v639_v37  ;;  %1082 = vmatprep.mubr.msk.bf16.mxu1 %vm788_vm6, %v1051_v55  ;;  %v637_v60 = vpop.permute.xlu0 %636 }
  0xd4   : > { %v730_v42 = vsel %vm724_vm5, %v713_v24, %v637_v60 }
  0xd5   : > { %v1050_v43 = vcombine.low %v730_v42, %v732_v38 }
  0xd6   : > { %v647_v47 = vpop.permute.xlu1 %646 }
  0xd7   : > { %v740_v39 = vsel %vm724_vm5, %v723_v46, %v647_v47  ;;  %1079 = vmatmul.mubr.msk.bf16.vlgmr.msra.gmra.mrb[0].mxu0 %vm788_vm6, %v1050_v43  ;;  %v645_v41 = vpop.permute.xlu0 %644 }
  0xd8   : > { %v738_v52 = vsel %vm724_vm5, %v721_v49, %v645_v41 }
  0xd9   : > { %v1052_v50 = vcombine.low %v738_v52, %v740_v39 }
  0xdb   : > { %1083 = vmatmul.mubr.msk.bf16.vlgmr.msra.gmra.mrb[0].mxu1 %vm788_vm6, %v1052_v50 }
 0x1aa   : > { %v1080_v51 = vpop.f32.mrb[0].mxu0 }
 0x1ab   : > { %v848_v53 = vadd.f32 %v1080_v51, %v1048_v44  ;;  %v839_v54 = vpop.f32.mrb[1].mxu0 }
 0x1ac   : > { %v840_v56 = vadd.f32 %v1048_v44, %v839_v54  ;;  %v1081_v57 = vpop.f32.mrb[2].mxu0 }
 0x1ad   : > { %v872_v58 = vmax.f32 %v848_v53, 0.0  ;;  %v851_v61 = vadd.f32 %v1081_v57, %v1048_v44  ;;  %v842_v62 = vpop.f32.mrb[3].mxu0 }
 0x1ae   : > { %v870_v63 = vmax.f32 %v840_v56, 0.0  ;;  %v843_v2 = vadd.f32 %v1048_v44, %v842_v62  ;;  %v1084_v3 = vpop.f32.mrb[0].mxu1 }
 0x1af   : > { %v880_v5 = vpack.c.bf16 %v872_v58, %v872_v58  ;;  %v873_v6 = vmax.f32 %v851_v61, 0.0  ;;  %v864_v8 = vadd.f32 %v1084_v3, %v1048_v44  ;;  %v855_v10 = vpop.f32.mrb[1].mxu1 }
 0x1b0   : > { %v878_v11 = vpack.c.bf16 %v870_v63, %v870_v63  ;;  %v871_v13 = vmax.f32 %v843_v2, 0.0  ;;  %v856_v14 = vadd.f32 %v1048_v44, %v855_v10  ;;  %v1085_v12 = vpop.f32.mrb[2].mxu1 }
 0x1b1   : > { %889 = vst.msk [vmem:[%s1461_s21 + $0x8] sm:$0xf] %vm886_vm7, %v880_v5  ;;  %v881_v7 = vpack.c.bf16 %v873_v6, %v873_v6  ;;  %v876_v0 = vmax.f32 %v864_v8, 0.0  ;;  %v867_v15 = vadd.f32 %v1085_v12, %v1048_v44  ;;  %v858_v16 = vpop.f32.mrb[3].mxu1 }
 0x1b2   : > { %887 = vst.msk [vmem:[%s1461_s21] sm:$0xf] %vm886_vm7, %v878_v11  ;;  %v879_v17 = vpack.c.bf16 %v871_v13, %v871_v13  ;;  %v874_v1 = vmax.f32 %v856_v14, 0.0  ;;  %v859_v18 = vadd.f32 %v1048_v44, %v858_v16 }
 0x1b3   : > { %890 = vst.msk [vmem:[%s1461_s21 + $0xc] sm:$0xf] %vm886_vm7, %v881_v7  ;;  %v884_v19 = vpack.c.bf16 %v876_v0, %v876_v0  ;;  %v877_v21 = vmax.f32 %v867_v15, 0.0 }
 0x1b4   : > { %888 = vst.msk [vmem:[%s1461_s21 + $0x4] sm:$0xf] %vm886_vm7, %v879_v17  ;;  %v882_v22 = vpack.c.bf16 %v874_v1, %v874_v1  ;;  %v875_v9 = vmax.f32 %v859_v18, 0.0 }
 0x1b5   : > { %893 = vst.msk [vmem:[%s1461_s21 + $0x18] sm:$0xf] %vm886_vm7, %v884_v19  ;;  %v885_v23 = vpack.c.bf16 %v877_v21, %v877_v21 }
 0x1b6   : > { %891 = vst.msk [vmem:[%s1461_s21 + $0x10] sm:$0xf] %vm886_vm7, %v882_v22  ;;  %v883_v25 = vpack.c.bf16 %v875_v9, %v875_v9 }
 0x1b7   : > { %894 = vst.msk [vmem:[%s1461_s21 + $0x1c] sm:$0xf] %vm886_vm7, %v885_v23 }
 0x1b8   : > { %892 = vst.msk [vmem:[%s1461_s21 + $0x14] sm:$0xf] %vm886_vm7, %v883_v25 }
 0x1b9 PF: > { %s14_s17 = sadd.s32 1, %s1184_s17   ;;  %s1493_s15 = smov %s1180_s16 }
 0x1ba   : > { %p11_p5 = scmp.ge.s32.totalorder %s14_s17, 4   ;;  %s1494_s16 = smov %s1496_s18 }
 0x1bc   :  { %13 = sbr.rel (!%p11_p5) target bundleno = 2 (0x2), region = 69 }

// kernel: backbone_base_forward.4
= control target key start
LH: loop header
LB: loop body
LE: loop exit
PB: predicated region body
PF: predicated region fallthrough
CT: control target
= control target key end

     0   :  { %s915_s15 = smov 0   ;;  %s917_s16 = smov 0   ;;  %s1075_s0 = inlined_call_operand.vmem [shape: bf16[2,10,5,32], index: 0, kind: input, shape index: {}, may-alias: {0,1}]   ;;  %s1076_s1 = inlined_call_operand.vmem [shape: bf16[2,10,5,32], index: 1, kind: input, shape index: {}, may-alias: {0,1}]   ;;  %s1077_s2 = inlined_call_operand.vmem [shape: bf16[144,32], index: 2, kind: input, shape index: {}]   ;;  %s1078_s3 = inlined_call_operand.vmem [shape: f32[1,32], index: 3, kind: input, shape index: {}]   ;;  %s1079_s4 = inlined_call_operand.vmem [shape: bf16[2,4,4,32], index: 4, kind: output, shape index: {}]  }
   0x1   :  { %s919_s17 = smov 0  }
   0x2 LB: > { %s26_s18 = sadd.s32 1, %s878_s16  ;;  %p779_p0 = scmp.ge.s32.totalorder %s882_s17, 1  ;;  %s882_s17 = sphi %s919_s17, %s14_s17   ;;  %s878_s16 = sphi %s917_s16, %s1081_s16   ;;  %s874_s15 = sphi %s915_s15, %s1080_s15  }
   0x3   : > { %p28_p1 = scmp.ge.s32.totalorder %s26_s18, 2  ;;  %p214_p2 = scmp.lt.s32.totalorder %s882_s17, 3 }
   0x5   : > { %s1083_s18 = smov (%p28_p1, %s26_s18), 0  ;;  %p215_p3 = pnand %p779_p0, %p214_p2 }
   0x6   : > { %p267_p4 = scmp.lt.s32.totalorder (!%p215_p3), %s874_s15, 1  ;;  %v851_v0 = vld [vmem:[%s1077_s2] sm:$0xff] (!%p215_p3)   ;;  %v884_v1 = vmov (!%p215_p3), 0   ;;  %v852_v2 = vld [vmem:[%s1077_s2 + $0x8] sm:$0xff] (!%p215_p3)   ;;  %s885_s28 = smov (!%p215_p3), 48   ;;  %v853_v14 = vld [vmem:[%s1077_s2 + $0x10] sm:$0xff] (!%p215_p3)  }
   0x7   : > { %218 = sbr.rel (%p215_p3) target bundleno = 399 (0x18f), region = 36  ;;  %612 = vmatprep.subr.bf16.mxu0 (!%p215_p3), %v884_v1  ;;  %v854_v20 = vld [vmem:[%s1077_s2 + $0x18] sm:$0xff] (!%p215_p3)   ;;  %v855_v33 = vld [vmem:[%s1077_s2 + $0x20] sm:$0xff] (!%p215_p3)   ;;  %s886_s12 = smov (!%p215_p3), 32   ;;  %v856_v42 = vld [vmem:[%s1077_s2 + $0x28] sm:$0xff] (!%p215_p3)   ;;  %vm434_vm0 = vcmask (!%p215_p3), 261120  }
   0x8   : > { %613 = vmatpush1.bf16.msra.mxu0 (!%p215_p3), %v851_v0  ;;  %v857_v49 = vld [vmem:[%s1077_s2 + $0x30] sm:$0xff] (!%p215_p3)   ;;  %v858_v52 = vld [vmem:[%s1077_s2 + $0x38] sm:$0xff] (!%p215_p3)   ;;  %v859_v53 = vld [vmem:[%s1077_s2 + $0x40] sm:$0xff] (!%p215_p3)   ;;  %s888_s26 = smov (!%p215_p3), 96   ;;  %v889_v63 = vmov (!%p215_p3), 1983009808  }
   0x9   : > { %614 = vmatprep.subr.bf16.mxu0 (!%p215_p3), %v884_v1  ;;  %v480_v0 = vunpack.c.l.s4 (!%p215_p3), %v889_v63  ;;  %vm447_vm1 = vcmask (!%p215_p3), 392192   ;;  %vm456_vm2 = vcmask (!%p215_p3), 654336   ;;  %vm465_vm3 = vcmask (!%p215_p3), 785408  }
   0xa   : > { %vm608_vm4 = vcmask (!%p215_p3), 130048   ;;  %vm665_vm5 = vcmask (!%p215_p3), 254976  }
   0xc   : > { %615 = vmatpush1.bf16.msra.mxu0 (!%p215_p3), %v852_v2 }
   0xd   : > { %616 = vmatprep.subr.bf16.mxu0 (!%p215_p3), %v884_v1 }
   0xe   : > { %s1085_s15 = smov (!%p267_p4, %s874_s15), 1 }
   0xf   : > { %s809_s21 = smul.u32 40, %s1085_s15 }
  0x10   : > { %617 = vmatpush1.bf16.msra.mxu0 %v853_v14 }
  0x11   : > { %s274_s24 = scalar_lea.vmem %s1075_s0, %s809_s21  ;;  %s947_s27 = sadd.s32 32, %s809_s21  ;;  %618 = vmatprep.subr.bf16.mxu0 %v884_v1 }
  0x12   : > { %v842_v3 = vld [vmem:[%s274_s24 + $0xc] ss:$0 sps:$4 sm:$0x77]   ;;  %v843_v4 = vld [vmem:[%s274_s24 + $0x4] ss:$0 sps:$4 sm:$0x77]   ;;  %s289_s5 = scalar_lea.vmem %s1076_s1, %s947_s27 }
  0x13   : > { %374 = vrot.lane.b32.xlu1 %v842_v3, %s885_s28  ;;  %v949_v5 = vld [vmem:[%s274_s24 + $0x1c] ss:$0 sps:$4 sm:$0x77]   ;;  %372 = vrot.lane.b32.xlu0 %v843_v4, %s885_s28  ;;  %v952_v6 = vld [vmem:[%s274_s24 + $0x14] ss:$0 sps:$4 sm:$0x77]  }
  0x14   : > { %v954_v7 = vld [vmem:[%s274_s24 + $0x10] sm:$0x7]  ;;  %v956_v8 = vld [vmem:[%s274_s24] sm:$0x7]  ;;  %v958_v9 = vld [vmem:[%s274_s24 + $0x18] sm:$0x7]  ;;  %619 = vmatpush1.bf16.msra.mxu0 %v854_v20 }
  0x15   : > { %v966_v10 = vcombine.low %v954_v7, %v954_v7  ;;  %v784_v11 = vcombine.low %v956_v8, %v956_v8  ;;  %v972_v12 = vcombine.low %v958_v9, %v958_v9  ;;  %v974_v13 = vld [vmem:[%s274_s24 + $0x8] sm:$0x7]  ;;  %v390_v23 = vshll.u32 %v842_v3, 16  ;;  %620 = vmatprep.subr.bf16.mxu0 %v884_v1  ;;  %s887_s21 = smov 80  }
  0x16   : > { %v982_v15 = vcombine.low %v974_v13, %v974_v13  ;;  %v383_v24 = vshll.u32 %v843_v4, 16  ;;  %v388_v34 = vshrl.u32 %v842_v3, 16  ;;  %v381_v36 = vshrl.u32 %v843_v4, 16  ;;  %v850_v54 = vld [vmem:[%s289_s5] ss:$0 sps:$4 sm:$0x77]  }
  0x17   : > { %378 = vrot.lane.b32.xlu1 %v949_v5, %s885_s28  ;;  %376 = vrot.lane.b32.xlu0 %v952_v6, %s885_s28  ;;  %v339_v16 = vshrl.u32 %v966_v10, 16  ;;  %v341_v17 = vshll.u32 %v966_v10, 16  ;;  %v325_v18 = vshrl.u32 %v784_v11, 16  ;;  %v327_v19 = vshll.u32 %v784_v11, 16  ;;  %s808_s5 = sshll.u32 %s1085_s15, 3 }
  0x18   : > { %v348_v21 = vshll.u32 %v972_v12, 16  ;;  %v334_v22 = vshll.u32 %v982_v15, 16  ;;  %v346_v27 = vshrl.u32 %v972_v12, 16  ;;  %v332_v28 = vshrl.u32 %v982_v15, 16  ;;  %621 = vmatpush1.bf16.msra.mxu0 %v855_v33  ;;  %s300_s8 = scalar_lea.vmem %s1079_s4, %s808_s5 }
  0x19   : > { %v343_v25 = vrot.slane %v341_v17, 1  ;;  %v329_v26 = vrot.slane %v327_v19, 1  ;;  %v392_v35 = vrot.slane %v390_v23, 1  ;;  %v385_v37 = vrot.slane %v383_v24, 1  ;;  %622 = vmatprep.subr.bf16.mxu0 %v884_v1 }
  0x1a   : > { %v350_v29 = vrot.slane %v348_v21, 1  ;;  %v336_v30 = vrot.slane %v334_v22, 1  ;;  %v404_v40 = vshll.u32 %v949_v5, 16  ;;  %v397_v41 = vshll.u32 %v952_v6, 16 }
  0x1b   : > { %v995_v31 = vor.u32 %v343_v25, %v339_v16  ;;  %v330_v32 = vor.u32 %v329_v26, %v325_v18  ;;  %v393_v43 = vor.u32 %v392_v35, %v388_v34  ;;  %v402_v44 = vshrl.u32 %v949_v5, 16 }
  0x1c   : > { %v1002_v38 = vor.u32 %v350_v29, %v346_v27  ;;  %v1004_v39 = vor.u32 %v336_v30, %v332_v28  ;;  %v386_v45 = vor.u32 %v385_v37, %v381_v36  ;;  %v406_v46 = vrot.slane %v404_v40, 1  ;;  %623 = vmatpush1.bf16.msra.mxu0 %v856_v42 }
  0x1d   : > { %356 = vrot.lane.b32.xlu1 %v995_v31, %s886_s12  ;;  %352 = vrot.lane.b32.xlu0 %v330_v32, %s886_s12  ;;  %v395_v47 = vshrl.u32 %v952_v6, 16  ;;  %v399_v48 = vrot.slane %v397_v41, 1  ;;  %v430_v4 = vshll.u32 %v850_v54, 16  ;;  %v481_v5 = vunpack.c.0.s8 %v480_v0 }
  0x1e   : > { %624 = vmatprep.subr.bf16.mxu0 %v884_v1  ;;  %v407_v50 = vor.u32 %v406_v46, %v402_v44 }
  0x1f   : > { %v400_v51 = vor.u32 %v399_v48, %v395_v47  ;;  %v432_v16 = vrot.slane %v430_v4, 1  ;;  %v793_v48 = vld [vmem:[%s1078_s3] ss:$0 sm:$0xff] }
  0x20   : > { %625 = vmatpush1.bf16.msra.mxu0 %v857_v49 }
  0x21   : > { %358 = vrot.lane.b32.xlu1 %v1002_v38, %s886_s12  ;;  %354 = vrot.lane.b32.xlu0 %v1004_v39, %s886_s12 }
  0x22   : > { %626 = vmatprep.subr.bf16.mxu0 %v884_v1 }
  0x24   : > { %627 = vmatpush1.bf16.msra.mxu0 %v858_v52 }
  0x25   : > { %410 = vrot.lane.b32.xlu1 %v393_v43, %s887_s21  ;;  %408 = vrot.lane.b32.xlu0 %v386_v45, %s887_s21 }
  0x26   : > { %628 = vmatprep.subr.bf16.mxu0 %v884_v1  ;;  %v482_v1 = vlaneseq }
  0x28   : > { %629 = vmatpush1.bf16.msra.mxu0 %v859_v53  ;;  %v483_v6 = vshrl.u32 %v482_v1, 7 }
  0x29   : > { %414 = vrot.lane.b32.xlu1 %v407_v50, %s887_s21  ;;  %412 = vrot.lane.b32.xlu0 %v400_v51, %s887_s21 }
  0x2a   : > { %v484_v19 = vsub.s32 %v481_v5, %v483_v6 }
  0x2d   : > { %421 = vrot.lane.b32.xlu1 %v966_v10, %s888_s26  ;;  %419 = vrot.lane.b32.xlu0 %v982_v15, %s888_s26  ;;  %v428_v15 = vshrl.u32 %v850_v54, 16 }
  0x2f   : > { %v433_v28 = vor.u32 %v432_v16, %v428_v15 }
  0x31   : > { %425 = vrot.lane.b32.xlu1 %v850_v54, %s888_s26  ;;  %423 = vrot.lane.b32.xlu0 %v972_v12, %s888_s26 }
  0x85   : > { %v375_v55 = vpop.permute.xlu1 %374  ;;  %v373_v56 = vpop.permute.xlu0 %372 }
  0x89   : > { %v379_v57 = vpop.permute.xlu1 %378  ;;  %v377_v58 = vpop.permute.xlu0 %376 }
  0x8f   : > { %v357_v59 = vpop.permute.xlu1 %356  ;;  %v353_v60 = vpop.permute.xlu0 %352 }
  0x90   : > { %v437_v10 = vsel %vm434_vm0, %v956_v8, %v353_v60  ;;  %v443_v20 = vsel %vm434_vm0, %v954_v7, %v357_v59 }
  0x91   : > { %v449_v18 = vsel %vm447_vm1, %v437_v10, %v373_v56  ;;  %v453_v29 = vsel %vm447_vm1, %v443_v20, %v377_v58 }
  0x93   : > { %v359_v61 = vpop.permute.xlu1 %358  ;;  %v355_v62 = vpop.permute.xlu0 %354 }
  0x94   : > { %v440_v11 = vsel %vm434_vm0, %v974_v13, %v355_v62  ;;  %v446_v8 = vsel %vm434_vm0, %v958_v9, %v359_v61 }
  0x95   : > { %v451_v17 = vsel %vm447_vm1, %v440_v11, %v375_v55  ;;  %v455_v7 = vsel %vm447_vm1, %v446_v8, %v379_v57 }
  0x97   : > { %v411_v2 = vpop.permute.xlu1 %410  ;;  %v409_v3 = vpop.permute.xlu0 %408 }
  0x98   : > { %v460_v13 = vsel %vm456_vm2, %v451_v17, %v411_v2  ;;  %v458_v21 = vsel %vm456_vm2, %v449_v18, %v409_v3 }
  0x9b   : > { %v415_v12 = vpop.permute.xlu1 %414  ;;  %v413_v14 = vpop.permute.xlu0 %412 }
  0x9c   : > { %v464_v9 = vsel %vm456_vm2, %v455_v7, %v415_v12  ;;  %v462_v30 = vsel %vm456_vm2, %v453_v29, %v413_v14 }
  0x9f   : > { %v422_v22 = vpop.permute.xlu1 %421  ;;  %v420_v23 = vpop.permute.xlu0 %419 }
  0xa0   : > { %v469_v24 = vsel %vm465_vm3, %v460_v13, %v422_v22  ;;  %v467_v25 = vsel %vm465_vm3, %v458_v21, %v420_v23 }
  0xa1   : > { %v486_v26 = vcombine.low %v469_v24, %v995_v31  ;;  %v478_v27 = vcombine.low %v467_v25, %v1004_v39 }
  0xa3   : > { %v493_v32 = vrot.slane %v486_v26, %v484_v19  ;;  %v485_v33 = vrot.slane %v478_v27, %v484_v19  ;;  %v426_v34 = vpop.permute.xlu1 %425  ;;  %v424_v35 = vpop.permute.xlu0 %423 }
  0xa4   : > { %v473_v36 = vsel %vm465_vm3, %v464_v9, %v426_v34  ;;  %v471_v37 = vsel %vm465_vm3, %v462_v30, %v424_v35 }
  0xa5   : > { %v502_v31 = vcombine.low %v473_v36, %v433_v28  ;;  %v494_v39 = vcombine.low %v471_v37, %v1002_v38  ;;  %v535_v42 = vcombine.low %v485_v33, %v493_v32 }
  0xa7   : > { %v509_v40 = vrot.slane %v502_v31, %v484_v19  ;;  %v501_v41 = vrot.slane %v494_v39, %v484_v19  ;;  %v543_v44 = vrot.slane %v535_v42, %v484_v19 }
  0xa9   : > { %v536_v43 = vcombine.low %v501_v41, %v509_v40 }
  0xab   : > { %v550_v45 = vrot.slane %v536_v43, %v484_v19 }
  0xad   : > { %v552_v46 = vcombine.high %v543_v44, %v550_v45  ;;  %v551_v47 = vcombine.low %v543_v44, %v550_v45 }
  0xaf   : > { %803 = vmatprep.mubr.msk.bf16.mxu0 %vm608_vm4, %v552_v46 }
  0xb0   : > { %645 = vmatmul.mubr.bf16.vlgmr.msra.gmra.mrb[0].mxu0 %v551_v47 }
 0x183   : > { %v646_v49 = vpop.f32.mrb[0].mxu0 }
 0x184   : > { %v647_v50 = vadd.f32 %v793_v48, %v646_v49  ;;  %v648_v51 = vpop.f32.mrb[1].mxu0 }
 0x185   : > { %v649_v38 = vpop.f32.mrb[2].mxu0 }
 0x186   : > { %v653_v52 = vmax.f32 %v647_v50, 0.0  ;;  %v650_v53 = vadd.f32 %v793_v48, %v649_v38  ;;  %v651_v54 = vpop.f32.mrb[3].mxu0 }
 0x188   : > { %v657_v55 = vcombine.high %v653_v52, %v653_v52  ;;  %v661_v56 = vpack.c.bf16 %v653_v52, %v653_v52  ;;  %v654_v57 = vmax.f32 %v650_v53, 0.0 }
 0x18a   : > { %v662_v58 = vpack.c.bf16 %v657_v55, %v657_v55  ;;  %666 = vst.msk [vmem:[%s300_s8] sm:$0x3] %vm665_vm5, %v661_v56  ;;  %v658_v59 = vcombine.high %v654_v57, %v654_v57  ;;  %v663_v60 = vpack.c.bf16 %v654_v57, %v654_v57 }
 0x18c   : > { %667 = vst.msk [vmem:[%s300_s8 + $0x2] sm:$0x3] %vm665_vm5, %v662_v58  ;;  %v664_v61 = vpack.c.bf16 %v658_v59, %v658_v59  ;;  %668 = vst.msk [vmem:[%s300_s8 + $0x4] sm:$0x3] %vm665_vm5, %v663_v60 }
 0x18e   : > { %669 = vst.msk [vmem:[%s300_s8 + $0x6] sm:$0x3] %vm665_vm5, %v664_v61 }
 0x18f PF: > { %s14_s17 = sadd.s32 1, %s882_s17   ;;  %s1080_s15 = smov %s878_s16 }
 0x190   : > { %p11_p5 = scmp.ge.s32.totalorder %s14_s17, 4   ;;  %s1081_s16 = smov %s1083_s18 }
 0x192   :  { %13 = sbr.rel (!%p11_p5) target bundleno = 2 (0x2), region = 69 }

// kernel: backbone_base_forward.5
= control target key start
LH: loop header
LB: loop body
LE: loop exit
PB: predicated region body
PF: predicated region fallthrough
CT: control target
= control target key end

     0   :  { %s1020_s15 = smov 0   ;;  %s1022_s16 = smov 0   ;;  %s1144_s0 = inlined_call_operand.vmem [shape: bf16[2,6,3,64], index: 0, kind: input, shape index: {}, may-alias: {0,1}]   ;;  %s1145_s1 = inlined_call_operand.vmem [shape: bf16[2,6,3,64], index: 1, kind: input, shape index: {}, may-alias: {0,1}]   ;;  %s1146_s2 = inlined_call_operand.vmem [shape: bf16[288,64], index: 2, kind: input, shape index: {}]   ;;  %s1147_s3 = inlined_call_operand.vmem [shape: f32[1,64], index: 3, kind: input, shape index: {}]   ;;  %s1148_s4 = inlined_call_operand.vmem [shape: bf16[2,2,2,64], index: 4, kind: output, shape index: {}]  }
   0x1   :  { %s1024_s17 = smov 0  }
   0x2 LB: > { %s26_s18 = sadd.s32 1, %s982_s16  ;;  %p848_p0 = scmp.ge.s32.totalorder %s986_s17, 1  ;;  %s986_s17 = sphi %s1024_s17, %s14_s17   ;;  %s982_s16 = sphi %s1022_s16, %s1150_s16   ;;  %s978_s15 = sphi %s1020_s15, %s1149_s15  }
   0x3   : > { %p28_p1 = scmp.ge.s32.totalorder %s26_s18, 2  ;;  %p214_p2 = scmp.lt.s32.totalorder %s986_s17, 3 }
   0x5   : > { %s1152_s18 = smov (%p28_p1, %s26_s18), 0  ;;  %p215_p3 = pnand %p848_p0, %p214_p2 }
   0x6   : > { %p266_p4 = scmp.lt.s32.totalorder (!%p215_p3), %s978_s15, 1  ;;  %v311_v0 = vlaneseq (!%p215_p3)  ;;  %v988_v1 = vmov (!%p215_p3), 1983009808   ;;  %v946_v4 = vld [vmem:[%s1146_s2 + $0x40] sm:$0xff] (!%p215_p3)   ;;  %v948_v7 = vld [vmem:[%s1146_s2 + $0x48] sm:$0xff] (!%p215_p3)   ;;  %v950_v12 = vld [vmem:[%s1146_s2 + $0x50] sm:$0xff] (!%p215_p3)  }
   0x7   : > { %218 = sbr.rel (%p215_p3) target bundleno = 398 (0x18e), region = 36  ;;  %v309_v2 = vunpack.c.l.s4 (!%p215_p3), %v988_v1  ;;  %v947_v5 = vld [vmem:[%s1146_s2] sm:$0xff] (!%p215_p3)   ;;  %879 = vmatprep.subr.bf16.mxu0 (!%p215_p3), %v946_v4  ;;  %v989_v8 = vmov (!%p215_p3), 1966171168   ;;  %v949_v10 = vld [vmem:[%s1146_s2 + $0x8] sm:$0xff] (!%p215_p3)   ;;  %s990_s11 = smov (!%p215_p3), 96  }
   0x8   : > { %v312_v3 = vshrl.u32 (!%p215_p3), %v311_v0, 7  ;;  %v424_v9 = vunpack.c.l.s4 (!%p215_p3), %v989_v8  ;;  %880 = vmatpush3.bf16.msra.mxu0 (!%p215_p3), %v947_v5  ;;  %v951_v31 = vld [vmem:[%s1146_s2 + $0x10] sm:$0xff] (!%p215_p3)   ;;  %v952_v32 = vld [vmem:[%s1146_s2 + $0x58] sm:$0xff] (!%p215_p3)   ;;  %s991_s22 = smov (!%p215_p3), 32   ;;  %v954_v42 = vld [vmem:[%s1146_s2 + $0x60] sm:$0xff] (!%p215_p3)   ;;  %s992_s27 = smov (!%p215_p3), 64  }
   0x9   : > { %v310_v6 = vunpack.c.0.s8 (!%p215_p3), %v309_v2  ;;  %881 = vmatprep.subr.bf16.mxu0 (!%p215_p3), %v948_v7  ;;  %v953_v36 = vld [vmem:[%s1146_s2 + $0x18] sm:$0xff] (!%p215_p3)   ;;  %v955_v48 = vld [vmem:[%s1146_s2 + $0x20] sm:$0xff] (!%p215_p3)   ;;  %v956_v49 = vld [vmem:[%s1146_s2 + $0x68] sm:$0xff] (!%p215_p3)   ;;  %v993_v50 = vmov (!%p215_p3), 0.0   ;;  %vm994_vm0 = vmmov (!%p215_p3), 0   ;;  %vm409_vm1 = vcmask (!%p215_p3), 261120  }
   0xa   : > { %v425_v22 = vunpack.c.0.s8 (!%p215_p3), %v424_v9  ;;  %904 = vmatprep.subr.bf16.mxu1 (!%p215_p3), %v993_v50  ;;  %v959_v51 = vld [vmem:[%s1146_s2 + $0x80] sm:$0xff] (!%p215_p3)   ;;  %908 = vmatprep.mubr.msk.bf16.mxu1 (!%p215_p3), %vm994_vm0, %v993_v50  ;;  %v957_v52 = vld [vmem:[%s1146_s2 + $0x28] sm:$0xff] (!%p215_p3)   ;;  %v958_v53 = vld [vmem:[%s1146_s2 + $0x70] sm:$0xff] (!%p215_p3)   ;;  %vm397_vm2 = vcmask (!%p215_p3), 523264   ;;  %vm404_vm3 = vcmask (!%p215_p3), 785408   ;;  %vm742_vm4 = vcmask (!%p215_p3), 516096  }
   0xb   : > { %v1056_v11 = vsub.s32 (!%p215_p3), %v310_v6, %v312_v3  ;;  %905 = vmatpush3.bf16.msra.mxu1 (!%p215_p3), %v959_v51  ;;  %v962_v54 = vld [vmem:[%s1146_s2 + $0x88] sm:$0xff] (!%p215_p3)   ;;  %v960_v55 = vld [vmem:[%s1146_s2 + $0x30] sm:$0xff] (!%p215_p3)   ;;  %v961_v56 = vld [vmem:[%s1146_s2 + $0x78] sm:$0xff] (!%p215_p3)  }
   0xc   : > { %882 = vmatpush3.bf16.msra.mxu0 (!%p215_p3), %v949_v10  ;;  %v1081_v38 = vsub.s32 (!%p215_p3), %v425_v22, %v312_v3  ;;  %906 = vmatprep.subr.bf16.mxu1 (!%p215_p3), %v993_v50  ;;  %v963_v57 = vld [vmem:[%s1146_s2 + $0x38] sm:$0xff] (!%p215_p3)  }
   0xd   : > { %883 = vmatprep.subr.bf16.mxu0 (!%p215_p3), %v950_v12 }
   0xe   : > { %s1154_s15 = smov (!%p266_p4, %s978_s15), 1 }
   0xf   : > { %s912_s25 = smul.u32 12, %s1154_s15  ;;  %907 = vmatpush3.bf16.msra.mxu1 %v962_v54  ;;  %s851_s24 = sshll.u32 %s1154_s15, 1 }
  0x10   : > { %884 = vmatpush3.bf16.msra.mxu0 %v951_v31 }
  0x11   : > { %s273_s30 = scalar_lea.vmem %s1144_s0, %s912_s25  ;;  %s878_s5 = sadd.s32 8, %s912_s25  ;;  %885 = vmatprep.subr.bf16.mxu0 %v952_v32 }
  0x12   : > { %v852_v13 = vld.sshfl [vmem:[%s273_s30 + $0x2] sm:$0x3 pattern:$0x76325410]  ;;  %v1061_v14 = vld [vmem:[%s273_s30 + $0x4] sm:$0x3]  ;;  %s288_s10 = scalar_lea.vmem %s1145_s1, %s878_s5 }
  0x13   : > { %356 = vrot.lane.b32.xlu1 %v852_v13, %s990_s11  ;;  %v853_v15 = vld.sshfl [vmem:[%s273_s30 + $0x6] sm:$0x3 pattern:$0x76325410]  ;;  %v361_v16 = vshrl.u32 %v852_v13, 16  ;;  %v363_v17 = vshll.u32 %v852_v13, 16  ;;  %v321_v18 = vrot.slane %v1061_v14, %v1056_v11 }
  0x14   : > { %v368_v19 = vshrl.u32 %v853_v15, 16  ;;  %v370_v20 = vshll.u32 %v853_v15, 16  ;;  %v1068_v21 = vld [vmem:[%s273_s30] sm:$0x3]  ;;  %886 = vmatpush3.bf16.msra.mxu0 %v953_v36 }
  0x15   : > { %v365_v23 = vrot.slane %v363_v17, 1  ;;  %v314_v24 = vrot.slane %v1068_v21, %v1056_v11  ;;  %v854_v25 = vld.sshfl [vmem:[%s288_s10] sm:$0x3 pattern:$0x76325410]  ;;  %v330_v26 = vshrl.u32 %v321_v18, 16  ;;  %887 = vmatprep.subr.bf16.mxu0 %v954_v42 }
  0x16   : > { %v372_v27 = vrot.slane %v370_v20, 1  ;;  %v391_v28 = vshrl.u32 %v854_v25, 16  ;;  %v393_v29 = vshll.u32 %v854_v25, 16  ;;  %v332_v30 = vshll.u32 %v321_v18, 16 }
  0x17   : > { %358 = vrot.lane.b32.xlu1 %v853_v15, %s990_s11  ;;  %v366_v33 = vor.u32 %v365_v23, %v361_v16  ;;  %v323_v34 = vshrl.u32 %v314_v24, 16  ;;  %v325_v35 = vshll.u32 %v314_v24, 16 }
  0x18   : > { %v373_v37 = vor.u32 %v372_v27, %v368_v19  ;;  %v395_v39 = vrot.slane %v393_v29, 1  ;;  %v334_v40 = vrot.slane %v332_v30, 1  ;;  %888 = vmatpush3.bf16.msra.mxu0 %v955_v48 }
  0x19   : > { %374 = vrot.lane.b32.xlu0 %v366_v33, %s991_s22  ;;  %v327_v41 = vrot.slane %v325_v35, 1  ;;  %889 = vmatprep.subr.bf16.mxu0 %v956_v49 }
  0x1a   : > { %v396_v43 = vor.u32 %v395_v39, %v391_v28  ;;  %v335_v44 = vor.u32 %v334_v40, %v330_v26  ;;  %v855_v28 = vld [vmem:[%s1147_s3] ss:$0 sm:$0xff] }
  0x1b   : > { %376 = vrot.lane.b32.xlu1 %v373_v37, %s991_s22  ;;  %v328_v45 = vor.u32 %v327_v41, %v323_v34 }
  0x1c   : > { %v459_v46 = vrot.slane %v396_v43, %v1081_v38  ;;  %v436_v47 = vrot.slane %v335_v44, %v1081_v38  ;;  %890 = vmatpush3.bf16.msra.mxu0 %v957_v52 }
  0x1d   : > { %336 = vrot.lane.b32.xlu0 %v328_v45, %s992_s27  ;;  %891 = vmatprep.subr.bf16.mxu0 %v958_v53 }
  0x1f   : > { %388 = vrot.lane.b32.xlu1 %v854_v25, %s992_s27 }
  0x20   : > { %892 = vmatpush3.bf16.msra.mxu0 %v960_v55 }
  0x21   : > { %338 = vrot.lane.b32.xlu0 %v335_v44, %s992_s27  ;;  %893 = vmatprep.subr.bf16.mxu0 %v961_v56 }
  0x24   : > { %894 = vmatpush3.bf16.msra.mxu0 %v963_v57 }
  0x25   : > { %386 = vrot.lane.b32.xlu0 %v321_v18, %s992_s27  ;;  %s298_s27 = scalar_lea.vmem %s1148_s4, %s851_s24 }
  0x85   : > { %v357_v58 = vpop.permute.xlu1 %356 }
  0x89   : > { %v359_v59 = vpop.permute.xlu1 %358 }
  0x8b   : > { %v375_v60 = vpop.permute.xlu0 %374 }
  0x8c   : > { %v411_v7 = vsel %vm409_vm1, %v357_v58, %v375_v60 }
  0x8d   : > { %v377_v61 = vpop.permute.xlu1 %376 }
  0x8e   : > { %v413_v63 = vsel %vm409_vm1, %v359_v59, %v377_v61 }
  0x8f   : > { %v337_v62 = vpop.permute.xlu0 %336 }
  0x90   : > { %v400_v3 = vsel %vm397_vm2, %v1068_v21, %v337_v62 }
  0x91   : > { %v389_v0 = vpop.permute.xlu1 %388  ;;  %v406_v10 = vsel %vm404_vm3, %v400_v3, %v357_v58 }
  0x92   : > { %v417_v4 = vsel %vm397_vm2, %v413_v63, %v389_v0 }
  0x93   : > { %v339_v1 = vpop.permute.xlu0 %338 }
  0x94   : > { %v403_v2 = vsel %vm397_vm2, %v1061_v14, %v339_v1 }
  0x95   : > { %v408_v5 = vsel %vm404_vm3, %v403_v2, %v359_v59 }
  0x96   : > { %v445_v6 = vcombine.low %v408_v5, %v417_v4 }
  0x97   : > { %v387_v8 = vpop.permute.xlu0 %386 }
  0x98   : > { %v452_v9 = vrot.slane %v445_v6, %v1081_v38  ;;  %v415_v12 = vsel %vm397_vm2, %v411_v7, %v387_v8 }
  0x99   : > { %v422_v13 = vcombine.low %v406_v10, %v415_v12 }
  0x9a   : > { %v460_v15 = vcombine.low %v452_v9, %v459_v46 }
  0x9b   : > { %v429_v16 = vrot.slane %v422_v13, %v1081_v38 }
  0x9c   : > { %v467_v17 = vrot.slane %v460_v15, %v1081_v38 }
  0x9d   : > { %v437_v18 = vcombine.low %v429_v16, %v436_v47 }
  0x9f   : > { %v444_v14 = vrot.slane %v437_v18, %v1081_v38 }
  0xa1   : > { %v511_v19 = vcombine.low %v444_v14, %v467_v17 }
  0xa3   : > { %v518_v20 = vrot.slane %v511_v19, %v1081_v38 }
  0xa5   : > { %v519_v21 = vcombine.high %v518_v20, %v518_v20  ;;  %v526_v22 = vrot.slane %v518_v20, %v1081_v38 }
  0xa7   : > { %v533_v23 = vrot.slane %v519_v21, %v1081_v38  ;;  %v534_v24 = vcombine.high %v526_v22, %v526_v22 }
  0xa9   : > { %680 = vmatprep.mubr.bf16.mxu0 %v533_v23  ;;  %909 = vmatmul.mubr.msk.bf16.vlgmr.msra.gmra.mrb[0].mxu1 %vm409_vm1, %v534_v24 }
  0xaa   : > { %681 = vmatmul.mubr.bf16.vlgmr.msra.gmra.mrb[0].mxu0 %v526_v22 }
 0x17c   : > { %v722_v25 = vpop.f32.mrb[0].mxu1 }
 0x17d   : > { %v895_v26 = vpop.f32.mrb[0].mxu0  ;;  %v910_v27 = vpop.f32.mrb[1].mxu1 }
 0x17e   : > { %v896_v29 = vpop.f32.mrb[1].mxu0  ;;  %v725_v30 = vpop.f32.mrb[2].mxu1 }
 0x17f   : > { %v897_v31 = vadd.f32 %v896_v29, %v895_v26  ;;  %v898_v32 = vpop.f32.mrb[2].mxu0  ;;  %v911_v33 = vpop.f32.mrb[3].mxu1 }
 0x180   : > { %v899_v34 = vpop.f32.mrb[3].mxu0 }
 0x181   : > { %v683_v35 = vadd.f32 %v897_v31, %v855_v28 }
 0x183   : > { %v723_v36 = vadd.f32 %v722_v25, %v683_v35 }
 0x185   : > { %v728_v37 = vmax.f32 %v723_v36, 0.0 }
 0x187   : > { %v736_v38 = vrot.slane %v728_v37, %v1056_v11 }
 0x189   : > { %v737_v39 = vcombine.high %v736_v38, %v736_v38  ;;  %v740_v40 = vpack.c.bf16 %v736_v38, %v736_v38 }
 0x18b   : > { %v741_v41 = vpack.c.bf16 %v737_v39, %v737_v39  ;;  %743 = vst.msk [vmem:[%s298_s27] sm:$0x1] %vm742_vm4, %v740_v40 }
 0x18d   : > { %744 = vst.msk [vmem:[%s298_s27 + $0x1] sm:$0x1] %vm742_vm4, %v741_v41 }
 0x18e PF: > { %s14_s17 = sadd.s32 1, %s986_s17   ;;  %s1149_s15 = smov %s982_s16 }
 0x18f   : > { %p11_p5 = scmp.ge.s32.totalorder %s14_s17, 4   ;;  %s1150_s16 = smov %s1152_s18 }
 0x191   :  { %13 = sbr.rel (!%p11_p5) target bundleno = 2 (0x2), region = 69 }

</bundles_post_ra>
